<compile_context>
chip_gen: v7x
topology: tpu7x:2x2x1
jax: 0.10.0
libtpu: 0.0.40
codegen_flags: <defaults>
</compile_context>

<pallas_src>
import functools

import jax
import jax.numpy as jnp
from jax.experimental import pallas as pl
from jax.experimental.pallas import tpu as pltpu

EPS = 1e-5  # nn.LayerNorm default


# ----------------------------------------------------------------------------
# Fused decoder-layer kernel (one grid step == one batch element)
# ----------------------------------------------------------------------------
def _layer_norm_f32(y, g, b):
    mu = jnp.mean(y, axis=-1, keepdims=True)
    var = jnp.mean((y - mu) ** 2, axis=-1, keepdims=True)
    return (y - mu) * jax.lax.rsqrt(var + EPS) * g + b


def _decoder_layer_kernel(
        tgt_ref, mem_ref, hpool_ref, hexp_ref,
        wqkv1_ref, bqkv1_ref, wo1_ref, bo1_ref, g1_ref, be1_ref,
        wq2_ref, bq2_ref, wkv2_ref, bkv2_ref, wo2_ref, bo2_ref, g2_ref, be2_ref,
        w1_ref, b1_ref, w2_ref, b2_ref, g3_ref, be3_ref,
        o_ref,
        *, num_heads, dim_q, dim_k):
    H = num_heads
    hdq = H * dim_q
    hdk = H * dim_k
    inv_scale = 1.0 / (float(dim_q) ** 0.5)

    x = tgt_ref[...].astype(jnp.float32)      # (S, D)   residual stream, f32
    mem = mem_ref[...].astype(jnp.float32)    # (Sm, D)
    hpool = hpool_ref[...]                    # (hdq, H) 0/1: sum over each head's dq lanes
    hexp = hexp_ref[...]                      # (H, hdk) 0/1: broadcast head weight to dk lanes

    def mm(a_f32, w_ref):
        # Large projections: bf16 operands on the MXU, f32 accumulation.
        return jnp.dot(a_f32.astype(jnp.bfloat16), w_ref[...],
                       preferred_element_type=jnp.float32)

    def attention(q, k, v):
        # q: (S, H*dq); k, v: (Skv, H*dk).  All heads fused: heads stay on the
        # lane axis, (query, key) pairs are sublane-stacked.  Single softmax.
        s_q, s_kv = q.shape[0], k.shape[0]
        prod = q[:, None, :] * k[None, :, :]                       # (S, Skv, hdq)  VPU
        s = jnp.dot(prod.reshape(s_q * s_kv, hdq), hpool,
                    preferred_element_type=jnp.float32)            # (S*Skv, H)
        s = s.reshape(s_q, s_kv, H) * inv_scale                    # (S, Skv, H)
        s = s - jnp.max(s, axis=1, keepdims=True)                  # softmax over keys
        p = jnp.exp(s)
        p = p * pl.reciprocal(jnp.sum(p, axis=1, keepdims=True), approx=True)
        pe = jnp.dot(p.reshape(s_q * s_kv, H), hexp,
                     preferred_element_type=jnp.float32)           # (S*Skv, hdk)
        return jnp.sum(pe.reshape(s_q, s_kv, hdk) * v[None, :, :],
                       axis=1)                                     # (S, hdk)

    # --- 1. self-attention + residual + LayerNorm ---------------------------
    qkv = mm(x, wqkv1_ref) + bqkv1_ref[...]          # (S, hdq + 2*hdk) fused QKV
    q = qkv[:, :hdq]
    k = qkv[:, hdq:hdq + hdk]
    v = qkv[:, hdq + hdk:]
    y = mm(attention(q, k, v), wo1_ref) + bo1_ref[...]
    x = _layer_norm_f32(x + y, g1_ref[...], be1_ref[...])

    # --- 2. cross-attention + residual + LayerNorm ---------------------------
    q = mm(x, wq2_ref) + bq2_ref[...]                # (S, hdq)
    kv = mm(mem, wkv2_ref) + bkv2_ref[...]           # (Sm, 2*hdk) fused K/V
    k = kv[:, :hdk]
    v = kv[:, hdk:]
    y = mm(attention(q, k, v), wo2_ref) + bo2_ref[...]
    x = _layer_norm_f32(x + y, g2_ref[...], be2_ref[...])

    # --- 3. feed-forward + residual + LayerNorm ------------------------------
    h = jnp.maximum(mm(x, w1_ref) + b1_ref[...], 0.0)
    y = mm(h, w2_ref) + b2_ref[...]
    x = _layer_norm_f32(x + y, g3_ref[...], be3_ref[...])

    # Output last-dim is D(=32) < 128 -> masked stores; lane-dense repacking is
    # an optional micro-opt (review: measure before keeping) so it is skipped.
    o_ref[...] = x.astype(o_ref.dtype)
    # TODO(synk): dropout (p=0.1) is identity here (eval mode); training-mode
    # stochastic dropout would need pltpu.prng_* inside the kernel.


# ----------------------------------------------------------------------------
# Wrapper
# ----------------------------------------------------------------------------
def decoder_layer(tgt, memory, params):
    """Forward pass of _DecoderLayer (eval mode, dropout == identity)."""
    B, S, D = tgt.shape
    Bm, Sm, Dm = memory.shape
    assert Bm == B and Dm == D
    a1, a2, ffn = params["attn1"], params["attn2"], params["ffn"]
    H, dq, dk = a1["num_heads"], a1["dim_q"], a1["dim_k"]
    assert dq == dk  # required by the scaled dot product (q.bmm(k^T))
    hdq, hdk = H * dq, H * dk
    F = ffn["w1"].shape[1]
    N = B * S

    weights = (
        params["pool_q"], params["pool_k"],
        a1["wqkv"], a1["bqkv"], a1["wo"], a1["bo"], a1["gamma"], a1["beta"],
        a2["wq"], a2["bq"], a2["wkv"], a2["bkv"], a2["wo"], a2["bo"],
        a2["gamma"], a2["beta"],
        ffn["w1"], ffn["b1"], ffn["w2"], ffn["b2"], ffn["gamma"], ffn["beta"],
    )

    def batch_spec(seq_len):
        # One batch element per grid step; batch dim squeezed out of the ref.
        return pl.BlockSpec((None, seq_len, D), lambda b: (b, 0, 0))

    def resident_spec(arr):
        # Whole-array block, constant index -> DMA'd once, resident in VMEM.
        assert arr.ndim == 2
        return pl.BlockSpec(arr.shape, lambda b: (0, 0))

    grid_spec = pltpu.PrefetchScalarGridSpec(
        num_scalar_prefetch=0,
        grid=(B,),
        in_specs=[batch_spec(S), batch_spec(Sm)] +
                 [resident_spec(w) for w in weights],
        out_specs=batch_spec(S),
    )

    # Advisory cost estimate (lets XLA schedule around this small custom call).
    flops = 2 * N * D * (hdq + 2 * hdk)                    # self-attn QKV proj
    flops += 2 * N * D * hdq + 2 * (B * Sm) * D * (2 * hdk)  # cross-attn projections
    flops += 2 * B * S * S * (hdq + hdk)                   # self-attn core
    flops += 2 * B * S * Sm * (hdq + hdk)                  # cross-attn core
    flops += 2 * (2 * N * hdk * D)                         # output projections
    flops += 2 * N * D * F + 2 * N * F * D                 # FFN
    transcendentals = B * H * S * (S + Sm) + 3 * N
    bytes_accessed = sum(int(a.size) * a.dtype.itemsize
                         for a in (tgt, memory) + weights)
    bytes_accessed += N * D * tgt.dtype.itemsize

    kernel = functools.partial(
        _decoder_layer_kernel, num_heads=H, dim_q=dq, dim_k=dk)

    out = pl.pallas_call(
        kernel,
        out_shape=jax.ShapeDtypeStruct((B, S, D), tgt.dtype),
        grid_spec=grid_spec,
        compiler_params=pltpu.CompilerParams(
            dimension_semantics=("parallel",)),   # v7x: shard batches over 2 TCs
        cost_estimate=pl.CostEstimate(
            flops=int(flops),
            transcendentals=int(transcendentals),
            bytes_accessed=int(bytes_accessed)),
    )(tgt, memory, *weights)
    return out


# ----------------------------------------------------------------------------
# Deterministic parameter init (mimics nn.Linear default U(-1/sqrt(fan_in), .)).
# Weights are packed lane-dense and stored in bf16 (matmul operands);
# biases / LayerNorm params / head-pooling matrices stay f32.
# ----------------------------------------------------------------------------
def _uniform(key, shape, bound, dtype=jnp.float32):
    return jax.random.uniform(key, shape, jnp.float32, -bound, bound).astype(dtype)


def make_mha_params(key, num_heads, dim_in, dim_q, dim_k, fuse_qkv=False):
    kq_w, kq_b, kkv_w, kkv_b, ko_w, ko_b = jax.random.split(key, 6)
    b_in = 1.0 / (dim_in ** 0.5)
    b_out = 1.0 / ((num_heads * dim_k) ** 0.5)
    p = {
        "num_heads": num_heads, "dim_q": dim_q, "dim_k": dim_k,
        # x @ wq == concat over heads of (x @ Wq_h^T)
        "wq": _uniform(kq_w, (dim_in, num_heads * dim_q), b_in, jnp.bfloat16),
        "bq": _uniform(kq_b, (1, num_heads * dim_q), b_in),
        # fused K|V slab: first H*dk cols = K heads, next H*dk cols = V heads
        "wkv": _uniform(kkv_w, (dim_in, 2 * num_heads * dim_k), b_in, jnp.bfloat16),
        "bkv": _uniform(kkv_b, (1, 2 * num_heads * dim_k), b_in),
        # output Linear(H*dk -> dim_in), stored transposed for x @ W^T
        "wo": _uniform(ko_w, (num_heads * dim_k, dim_in), b_out, jnp.bfloat16),
        "bo": _uniform(ko_b, (1, dim_in), b_out),
        "gamma": jnp.ones((1, dim_in), jnp.float32),
        "beta": jnp.zeros((1, dim_in), jnp.float32),
    }
    if fuse_qkv:
        # Pre-pack the fused QKV slab ONCE at parameter-build time (perf review:
        # no per-call concat / extra HBM round trip for the weight slab).
        p["wqkv"] = jnp.concatenate([p["wq"], p["wkv"]], axis=1)
        p["bqkv"] = jnp.concatenate([p["bq"], p["bkv"]], axis=1)
    return p


def make_ffn_params(key, dim_model, dim_ff):
    k1w, k1b, k2w, k2b = jax.random.split(key, 4)
    b1 = 1.0 / (dim_model ** 0.5)
    b2 = 1.0 / (dim_ff ** 0.5)
    return {
        "w1": _uniform(k1w, (dim_model, dim_ff), b1, jnp.bfloat16),
        "b1": _uniform(k1b, (1, dim_ff), b1),
        "w2": _uniform(k2w, (dim_ff, dim_model), b2, jnp.bfloat16),
        "b2": _uniform(k2b, (1, dim_model), b2),
        "gamma": jnp.ones((1, dim_model), jnp.float32),
        "beta": jnp.zeros((1, dim_model), jnp.float32),
    }


def make_decoder_params(key, dim_model, num_heads, dim_feedforward):
    dq = dk = max(dim_model // num_heads, 1)
    k1, k2, k3 = jax.random.split(key, 3)
    params = {
        "attn1": make_mha_params(k1, num_heads, dim_model, dq, dk, fuse_qkv=True),
        "attn2": make_mha_params(k2, num_heads, dim_model, dq, dk),
        "ffn": make_ffn_params(k3, dim_model, dim_feedforward),
    }
    # Static 0/1 head pooling / expansion matrices (built once, passed resident).
    head_q = jnp.repeat(jnp.arange(num_heads), dq)            # (H*dq,)
    head_k = jnp.repeat(jnp.arange(num_heads), dk)            # (H*dk,)
    params["pool_q"] = (head_q[:, None] ==
                        jnp.arange(num_heads)[None, :]).astype(jnp.float32)   # (H*dq, H)
    params["pool_k"] = (jnp.arange(num_heads)[:, None] ==
                        head_k[None, :]).astype(jnp.float32)                  # (H, H*dk)
    return params


# ----------------------------------------------------------------------------
# Pure-JAX reference (same packed params) for a loose numerical sanity check.
# ----------------------------------------------------------------------------
def decoder_layer_reference(tgt, memory, params):
    a1, a2, ffn = params["attn1"], params["attn2"], params["ffn"]
    H, dq, dk = a1["num_heads"], a1["dim_q"], a1["dim_k"]
    hdk = H * dk

    def layer_norm(y, g, b):
        mu = jnp.mean(y, -1, keepdims=True)
        var = jnp.mean((y - mu) ** 2, -1, keepdims=True)
        return (y - mu) / jnp.sqrt(var + EPS) * g + b

    def mha(p, q_in, kv_in):
        q = q_in @ p["wq"].astype(jnp.float32) + p["bq"]
        kv = kv_in @ p["wkv"].astype(jnp.float32) + p["bkv"]
        k, v = kv[..., :hdk], kv[..., hdk:]
        B, S, _ = q.shape
        Skv = k.shape[1]
        qh = q.reshape(B, S, H, dq).transpose(0, 2, 1, 3)
        kh = k.reshape(B, Skv, H, dk).transpose(0, 2, 1, 3)
        vh = v.reshape(B, Skv, H, dk).transpose(0, 2, 1, 3)
        s = jnp.einsum("bhqd,bhkd->bhqk", qh, kh) / (dq ** 0.5)
        w = jax.nn.softmax(s, axis=-1)
        o = jnp.einsum("bhqk,bhkd->bhqd", w, vh)
        o = o.transpose(0, 2, 1, 3).reshape(B, S, hdk)
        return o @ p["wo"].astype(jnp.float32) + p["bo"]

    x = layer_norm(tgt + mha(a1, tgt, tgt), a1["gamma"], a1["beta"])
    x = layer_norm(x + mha(a2, x, memory), a2["gamma"], a2["beta"])
    h = jnp.maximum(x @ ffn["w1"].astype(jnp.float32) + ffn["b1"], 0.0)
    y = h @ ffn["w2"].astype(jnp.float32) + ffn["b2"]
    return layer_norm(x + y, ffn["gamma"], ffn["beta"])


# ----------------------------------------------------------------------------
if __name__ == "__main__":
    # Shapes consistent with the module: dim_model=32, num_heads=4,
    # dim_q = dim_k = max(32 // 4, 1) = 8, dim_feedforward=64.
    B, S, D = 2, 8, 32
    H = 4
    DFF = 64

    key = jax.random.PRNGKey(0)
    k_tgt, k_mem, k_par = jax.random.split(key, 3)

    tgt = jax.random.normal(k_tgt, (B, S, D), jnp.float32)
    memory = jax.random.normal(k_mem, (B, S, D), jnp.float32)

    params = make_decoder_params(k_par, dim_model=D, num_heads=H,
                                 dim_feedforward=DFF)

    out = decoder_layer(tgt, memory, params)
    out = jax.block_until_ready(out)
    assert out.shape == (B, S, D), out.shape
    assert bool(jnp.all(jnp.isfinite(out)))

    # Loose parity check vs f32 reference (differences come from bf16 matmul
    # operands and the approximate softmax reciprocal).
    ref = decoder_layer_reference(tgt, memory, params)
    max_err = float(jnp.max(jnp.abs(out - ref)))
    assert max_err < 0.15, max_err

    print("KERNEL_OK")
</pallas_src>

<mosaic_0001>
module attributes {stable_mosaic.version = 11 : i64} {
  func.func @_decoder_layer_kernel(%arg0: i32, %arg1: memref<1x8x32xf32, #tpu.memory_space<vmem>>, %arg2: memref<1x8x32xf32, #tpu.memory_space<vmem>>, %arg3: memref<32x4xf32, #tpu.memory_space<vmem>>, %arg4: memref<4x32xf32, #tpu.memory_space<vmem>>, %arg5: memref<32x96xbf16, #tpu.memory_space<vmem>>, %arg6: memref<1x96xf32, #tpu.memory_space<vmem>>, %arg7: memref<32x32xbf16, #tpu.memory_space<vmem>>, %arg8: memref<1x32xf32, #tpu.memory_space<vmem>>, %arg9: memref<1x32xf32, #tpu.memory_space<vmem>>, %arg10: memref<1x32xf32, #tpu.memory_space<vmem>>, %arg11: memref<32x32xbf16, #tpu.memory_space<vmem>>, %arg12: memref<1x32xf32, #tpu.memory_space<vmem>>, %arg13: memref<32x64xbf16, #tpu.memory_space<vmem>>, %arg14: memref<1x64xf32, #tpu.memory_space<vmem>>, %arg15: memref<32x32xbf16, #tpu.memory_space<vmem>>, %arg16: memref<1x32xf32, #tpu.memory_space<vmem>>, %arg17: memref<1x32xf32, #tpu.memory_space<vmem>>, %arg18: memref<1x32xf32, #tpu.memory_space<vmem>>, %arg19: memref<32x64xbf16, #tpu.memory_space<vmem>>, %arg20: memref<1x64xf32, #tpu.memory_space<vmem>>, %arg21: memref<64x32xbf16, #tpu.memory_space<vmem>>, %arg22: memref<1x32xf32, #tpu.memory_space<vmem>>, %arg23: memref<1x32xf32, #tpu.memory_space<vmem>>, %arg24: memref<1x32xf32, #tpu.memory_space<vmem>>, %arg25: memref<1x8x32xf32, #tpu.memory_space<vmem>>) attributes {dimension_semantics = [#tpu.dimension_semantics<parallel>], iteration_bounds = array<i64: 2>, scalar_prefetch = 0 : i64, scratch_operands = 0 : i64, tpu.core_type = #tpu.core_type<tc>, window_params = [{transform_indices = @transform_0, window_bounds = array<i64: 1, 8, 32>}, {transform_indices = @transform_1, window_bounds = array<i64: 1, 8, 32>}, {pipeline_mode = #tpu.pipeline_mode<synchronous>, transform_indices = @transform_2, window_bounds = array<i64: 32, 4>}, {pipeline_mode = #tpu.pipeline_mode<synchronous>, transform_indices = @transform_3, window_bounds = array<i64: 4, 32>}, {pipeline_mode = #tpu.pipeline_mode<synchronous>, transform_indices = @transform_4, window_bounds = array<i64: 32, 96>}, {pipeline_mode = #tpu.pipeline_mode<synchronous>, transform_indices = @transform_5, window_bounds = array<i64: 1, 96>}, {pipeline_mode = #tpu.pipeline_mode<synchronous>, transform_indices = @transform_6, window_bounds = array<i64: 32, 32>}, {pipeline_mode = #tpu.pipeline_mode<synchronous>, transform_indices = @transform_7, window_bounds = array<i64: 1, 32>}, {pipeline_mode = #tpu.pipeline_mode<synchronous>, transform_indices = @transform_8, window_bounds = array<i64: 1, 32>}, {pipeline_mode = #tpu.pipeline_mode<synchronous>, transform_indices = @transform_9, window_bounds = array<i64: 1, 32>}, {pipeline_mode = #tpu.pipeline_mode<synchronous>, transform_indices = @transform_10, window_bounds = array<i64: 32, 32>}, {pipeline_mode = #tpu.pipeline_mode<synchronous>, transform_indices = @transform_11, window_bounds = array<i64: 1, 32>}, {pipeline_mode = #tpu.pipeline_mode<synchronous>, transform_indices = @transform_12, window_bounds = array<i64: 32, 64>}, {pipeline_mode = #tpu.pipeline_mode<synchronous>, transform_indices = @transform_13, window_bounds = array<i64: 1, 64>}, {pipeline_mode = #tpu.pipeline_mode<synchronous>, transform_indices = @transform_14, window_bounds = array<i64: 32, 32>}, {pipeline_mode = #tpu.pipeline_mode<synchronous>, transform_indices = @transform_15, window_bounds = array<i64: 1, 32>}, {pipeline_mode = #tpu.pipeline_mode<synchronous>, transform_indices = @transform_16, window_bounds = array<i64: 1, 32>}, {pipeline_mode = #tpu.pipeline_mode<synchronous>, transform_indices = @transform_17, window_bounds = array<i64: 1, 32>}, {pipeline_mode = #tpu.pipeline_mode<synchronous>, transform_indices = @transform_18, window_bounds = array<i64: 32, 64>}, {pipeline_mode = #tpu.pipeline_mode<synchronous>, transform_indices = @transform_19, window_bounds = array<i64: 1, 64>}, {pipeline_mode = #tpu.pipeline_mode<synchronous>, transform_indices = @transform_20, window_bounds = array<i64: 64, 32>}, {pipeline_mode = #tpu.pipeline_mode<synchronous>, transform_indices = @transform_21, window_bounds = array<i64: 1, 32>}, {pipeline_mode = #tpu.pipeline_mode<synchronous>, transform_indices = @transform_22, window_bounds = array<i64: 1, 32>}, {pipeline_mode = #tpu.pipeline_mode<synchronous>, transform_indices = @transform_23, window_bounds = array<i64: 1, 32>}, {transform_indices = @transform_24, window_bounds = array<i64: 1, 8, 32>}]} {
    %c0 = arith.constant 0 : index
    %c0_0 = arith.constant 0 : index
    %c0_1 = arith.constant 0 : index
    %0 = vector.load %arg1[%c0, %c0_0, %c0_1] : memref<1x8x32xf32, #tpu.memory_space<vmem>>, vector<1x8x32xf32>
    %1 = vector.shape_cast %0 : vector<1x8x32xf32> to vector<8x32xf32>
    %c0_2 = arith.constant 0 : index
    %c0_3 = arith.constant 0 : index
    %c0_4 = arith.constant 0 : index
    %2 = vector.load %arg2[%c0_2, %c0_3, %c0_4] : memref<1x8x32xf32, #tpu.memory_space<vmem>>, vector<1x8x32xf32>
    %3 = vector.shape_cast %2 : vector<1x8x32xf32> to vector<8x32xf32>
    %c0_5 = arith.constant 0 : index
    %c0_6 = arith.constant 0 : index
    %4 = vector.load %arg3[%c0_5, %c0_6] : memref<32x4xf32, #tpu.memory_space<vmem>>, vector<32x4xf32>
    %c0_7 = arith.constant 0 : index
    %c0_8 = arith.constant 0 : index
    %5 = vector.load %arg4[%c0_7, %c0_8] : memref<4x32xf32, #tpu.memory_space<vmem>>, vector<4x32xf32>
    %6 = arith.truncf %1 : vector<8x32xf32> to vector<8x32xbf16>
    %c0_9 = arith.constant 0 : index
    %c0_10 = arith.constant 0 : index
    %7 = vector.load %arg5[%c0_9, %c0_10] : memref<32x96xbf16, #tpu.memory_space<vmem>>, vector<32x96xbf16>
    %cst = arith.constant dense<0.000000e+00> : vector<8x96xf32>
    %8 = tpu.matmul %6, %7, %cst {dimension_numbers = #tpu.dot_dimension_numbers<[1], [0], [0], [1], [0, 0, 1, 1], [], []>} : vector<8x32xbf16>, vector<32x96xbf16>, vector<8x96xf32> -> vector<8x96xf32>
    %c0_11 = arith.constant 0 : index
    %c0_12 = arith.constant 0 : index
    %9 = vector.load %arg6[%c0_11, %c0_12] : memref<1x96xf32, #tpu.memory_space<vmem>>, vector<1x96xf32>
    %10 = vector.broadcast %9 : vector<1x96xf32> to vector<8x96xf32>
    %11 = arith.addf %8, %10 : vector<8x96xf32>
    %12 = vector.extract_strided_slice %11 {offsets = [0, 0], sizes = [8, 32], strides = [1, 1]} : vector<8x96xf32> to vector<8x32xf32>
    %13 = vector.extract_strided_slice %11 {offsets = [0, 32], sizes = [8, 32], strides = [1, 1]} : vector<8x96xf32> to vector<8x32xf32>
    %14 = vector.extract_strided_slice %11 {offsets = [0, 64], sizes = [8, 32], strides = [1, 1]} : vector<8x96xf32> to vector<8x32xf32>
    %15 = vector.shape_cast %12 : vector<8x32xf32> to vector<8x1x32xf32>
    %16 = vector.shape_cast %13 : vector<8x32xf32> to vector<1x8x32xf32>
    %17 = vector.broadcast %15 : vector<8x1x32xf32> to vector<8x8x32xf32>
    %18 = vector.broadcast %16 : vector<1x8x32xf32> to vector<8x8x32xf32>
    %19 = arith.mulf %17, %18 : vector<8x8x32xf32>
    %20 = vector.shape_cast %19 : vector<8x8x32xf32> to vector<64x32xf32>
    %cst_13 = arith.constant dense<0.000000e+00> : vector<64x4xf32>
    %21 = tpu.matmul %20, %4, %cst_13 {dimension_numbers = #tpu.dot_dimension_numbers<[1], [0], [0], [1], [0, 0, 1, 1], [], []>} : vector<64x32xf32>, vector<32x4xf32>, vector<64x4xf32> -> vector<64x4xf32>
    %22 = vector.shape_cast %21 : vector<64x4xf32> to vector<8x8x4xf32>
    %cst_14 = arith.constant 0.353553385 : f32
    %23 = vector.broadcast %cst_14 : f32 to vector<8x8x4xf32>
    %24 = arith.mulf %22, %23 : vector<8x8x4xf32>
    %cst_15 = arith.constant dense<0xFF800000> : vector<8x4xf32>
    %25 = vector.multi_reduction <maximumf>, %24, %cst_15 [1] : vector<8x8x4xf32> to vector<8x4xf32>
    %26 = vector.shape_cast %25 : vector<8x4xf32> to vector<8x1x4xf32>
    %27 = vector.broadcast %26 : vector<8x1x4xf32> to vector<8x8x4xf32>
    %28 = arith.subf %24, %27 : vector<8x8x4xf32>
    %29 = math.exp %28 : vector<8x8x4xf32>
    %cst_16 = arith.constant dense<0.000000e+00> : vector<8x4xf32>
    %30 = vector.multi_reduction <add>, %29, %cst_16 [1] : vector<8x8x4xf32> to vector<8x4xf32>
    %31 = vector.shape_cast %30 : vector<8x4xf32> to vector<8x1x4xf32>
    %32 = tpu.reciprocal %31 {approx = true} : vector<8x1x4xf32> -> vector<8x1x4xf32>
    %33 = vector.broadcast %32 : vector<8x1x4xf32> to vector<8x8x4xf32>
    %34 = arith.mulf %29, %33 : vector<8x8x4xf32>
    %35 = vector.shape_cast %34 : vector<8x8x4xf32> to vector<64x4xf32>
    %cst_17 = arith.constant dense<0.000000e+00> : vector<64x32xf32>
    %36 = tpu.matmul %35, %5, %cst_17 {dimension_numbers = #tpu.dot_dimension_numbers<[1], [0], [0], [1], [0, 0, 1, 1], [], []>} : vector<64x4xf32>, vector<4x32xf32>, vector<64x32xf32> -> vector<64x32xf32>
    %37 = vector.shape_cast %36 : vector<64x32xf32> to vector<8x8x32xf32>
    %38 = vector.shape_cast %14 : vector<8x32xf32> to vector<1x8x32xf32>
    %39 = vector.broadcast %38 : vector<1x8x32xf32> to vector<8x8x32xf32>
    %40 = arith.mulf %37, %39 : vector<8x8x32xf32>
    %cst_18 = arith.constant dense<0.000000e+00> : vector<8x32xf32>
    %41 = vector.multi_reduction <add>, %40, %cst_18 [1] : vector<8x8x32xf32> to vector<8x32xf32>
    %42 = arith.truncf %41 : vector<8x32xf32> to vector<8x32xbf16>
    %c0_19 = arith.constant 0 : index
    %c0_20 = arith.constant 0 : index
    %43 = vector.load %arg7[%c0_19, %c0_20] : memref<32x32xbf16, #tpu.memory_space<vmem>>, vector<32x32xbf16>
    %cst_21 = arith.constant dense<0.000000e+00> : vector<8x32xf32>
    %44 = tpu.matmul %42, %43, %cst_21 {dimension_numbers = #tpu.dot_dimension_numbers<[1], [0], [0], [1], [0, 0, 1, 1], [], []>} : vector<8x32xbf16>, vector<32x32xbf16>, vector<8x32xf32> -> vector<8x32xf32>
    %c0_22 = arith.constant 0 : index
    %c0_23 = arith.constant 0 : index
    %45 = vector.load %arg8[%c0_22, %c0_23] : memref<1x32xf32, #tpu.memory_space<vmem>>, vector<1x32xf32>
    %46 = vector.broadcast %45 : vector<1x32xf32> to vector<8x32xf32>
    %47 = arith.addf %44, %46 : vector<8x32xf32>
    %48 = arith.addf %1, %47 : vector<8x32xf32>
    %c0_24 = arith.constant 0 : index
    %c0_25 = arith.constant 0 : index
    %49 = vector.load %arg9[%c0_24, %c0_25] : memref<1x32xf32, #tpu.memory_space<vmem>>, vector<1x32xf32>
    %c0_26 = arith.constant 0 : index
    %c0_27 = arith.constant 0 : index
    %50 = vector.load %arg10[%c0_26, %c0_27] : memref<1x32xf32, #tpu.memory_space<vmem>>, vector<1x32xf32>
    %cst_28 = arith.constant dense<0.000000e+00> : vector<8xf32>
    %51 = vector.multi_reduction <add>, %48, %cst_28 [1] : vector<8x32xf32> to vector<8xf32>
    %52 = vector.shape_cast %51 : vector<8xf32> to vector<8x1xf32>
    %cst_29 = arith.constant 3.200000e+01 : f32
    %53 = vector.broadcast %cst_29 : f32 to vector<8x1xf32>
    %54 = arith.divf %52, %53 : vector<8x1xf32>
    %55 = vector.broadcast %54 : vector<8x1xf32> to vector<8x32xf32>
    %56 = arith.subf %48, %55 : vector<8x32xf32>
    %57 = arith.mulf %56, %56 : vector<8x32xf32>
    %cst_30 = arith.constant dense<0.000000e+00> : vector<8xf32>
    %58 = vector.multi_reduction <add>, %57, %cst_30 [1] : vector<8x32xf32> to vector<8xf32>
    %59 = vector.shape_cast %58 : vector<8xf32> to vector<8x1xf32>
    %cst_31 = arith.constant 3.200000e+01 : f32
    %60 = vector.broadcast %cst_31 : f32 to vector<8x1xf32>
    %61 = arith.divf %59, %60 : vector<8x1xf32>
    %62 = vector.broadcast %54 : vector<8x1xf32> to vector<8x32xf32>
    %63 = arith.subf %48, %62 : vector<8x32xf32>
    %cst_32 = arith.constant 9.99999974E-6 : f32
    %64 = vector.broadcast %cst_32 : f32 to vector<8x1xf32>
    %65 = arith.addf %61, %64 : vector<8x1xf32>
    %66 = math.rsqrt %65 : vector<8x1xf32>
    %67 = vector.broadcast %66 : vector<8x1xf32> to vector<8x32xf32>
    %68 = arith.mulf %63, %67 : vector<8x32xf32>
    %69 = vector.broadcast %49 : vector<1x32xf32> to vector<8x32xf32>
    %70 = arith.mulf %68, %69 : vector<8x32xf32>
    %71 = vector.broadcast %50 : vector<1x32xf32> to vector<8x32xf32>
    %72 = arith.addf %70, %71 : vector<8x32xf32>
    %73 = arith.truncf %72 : vector<8x32xf32> to vector<8x32xbf16>
    %c0_33 = arith.constant 0 : index
    %c0_34 = arith.constant 0 : index
    %74 = vector.load %arg11[%c0_33, %c0_34] : memref<32x32xbf16, #tpu.memory_space<vmem>>, vector<32x32xbf16>
    %cst_35 = arith.constant dense<0.000000e+00> : vector<8x32xf32>
    %75 = tpu.matmul %73, %74, %cst_35 {dimension_numbers = #tpu.dot_dimension_numbers<[1], [0], [0], [1], [0, 0, 1, 1], [], []>} : vector<8x32xbf16>, vector<32x32xbf16>, vector<8x32xf32> -> vector<8x32xf32>
    %c0_36 = arith.constant 0 : index
    %c0_37 = arith.constant 0 : index
    %76 = vector.load %arg12[%c0_36, %c0_37] : memref<1x32xf32, #tpu.memory_space<vmem>>, vector<1x32xf32>
    %77 = vector.broadcast %76 : vector<1x32xf32> to vector<8x32xf32>
    %78 = arith.addf %75, %77 : vector<8x32xf32>
    %79 = arith.truncf %3 : vector<8x32xf32> to vector<8x32xbf16>
    %c0_38 = arith.constant 0 : index
    %c0_39 = arith.constant 0 : index
    %80 = vector.load %arg13[%c0_38, %c0_39] : memref<32x64xbf16, #tpu.memory_space<vmem>>, vector<32x64xbf16>
    %cst_40 = arith.constant dense<0.000000e+00> : vector<8x64xf32>
    %81 = tpu.matmul %79, %80, %cst_40 {dimension_numbers = #tpu.dot_dimension_numbers<[1], [0], [0], [1], [0, 0, 1, 1], [], []>} : vector<8x32xbf16>, vector<32x64xbf16>, vector<8x64xf32> -> vector<8x64xf32>
    %c0_41 = arith.constant 0 : index
    %c0_42 = arith.constant 0 : index
    %82 = vector.load %arg14[%c0_41, %c0_42] : memref<1x64xf32, #tpu.memory_space<vmem>>, vector<1x64xf32>
    %83 = vector.broadcast %82 : vector<1x64xf32> to vector<8x64xf32>
    %84 = arith.addf %81, %83 : vector<8x64xf32>
    %85 = vector.extract_strided_slice %84 {offsets = [0, 0], sizes = [8, 32], strides = [1, 1]} : vector<8x64xf32> to vector<8x32xf32>
    %86 = vector.extract_strided_slice %84 {offsets = [0, 32], sizes = [8, 32], strides = [1, 1]} : vector<8x64xf32> to vector<8x32xf32>
    %87 = vector.shape_cast %78 : vector<8x32xf32> to vector<8x1x32xf32>
    %88 = vector.shape_cast %85 : vector<8x32xf32> to vector<1x8x32xf32>
    %89 = vector.broadcast %87 : vector<8x1x32xf32> to vector<8x8x32xf32>
    %90 = vector.broadcast %88 : vector<1x8x32xf32> to vector<8x8x32xf32>
    %91 = arith.mulf %89, %90 : vector<8x8x32xf32>
    %92 = vector.shape_cast %91 : vector<8x8x32xf32> to vector<64x32xf32>
    %cst_43 = arith.constant dense<0.000000e+00> : vector<64x4xf32>
    %93 = tpu.matmul %92, %4, %cst_43 {dimension_numbers = #tpu.dot_dimension_numbers<[1], [0], [0], [1], [0, 0, 1, 1], [], []>} : vector<64x32xf32>, vector<32x4xf32>, vector<64x4xf32> -> vector<64x4xf32>
    %94 = vector.shape_cast %93 : vector<64x4xf32> to vector<8x8x4xf32>
    %cst_44 = arith.constant 0.353553385 : f32
    %95 = vector.broadcast %cst_44 : f32 to vector<8x8x4xf32>
    %96 = arith.mulf %94, %95 : vector<8x8x4xf32>
    %cst_45 = arith.constant dense<0xFF800000> : vector<8x4xf32>
    %97 = vector.multi_reduction <maximumf>, %96, %cst_45 [1] : vector<8x8x4xf32> to vector<8x4xf32>
    %98 = vector.shape_cast %97 : vector<8x4xf32> to vector<8x1x4xf32>
    %99 = vector.broadcast %98 : vector<8x1x4xf32> to vector<8x8x4xf32>
    %100 = arith.subf %96, %99 : vector<8x8x4xf32>
    %101 = math.exp %100 : vector<8x8x4xf32>
    %cst_46 = arith.constant dense<0.000000e+00> : vector<8x4xf32>
    %102 = vector.multi_reduction <add>, %101, %cst_46 [1] : vector<8x8x4xf32> to vector<8x4xf32>
    %103 = vector.shape_cast %102 : vector<8x4xf32> to vector<8x1x4xf32>
    %104 = tpu.reciprocal %103 {approx = true} : vector<8x1x4xf32> -> vector<8x1x4xf32>
    %105 = vector.broadcast %104 : vector<8x1x4xf32> to vector<8x8x4xf32>
    %106 = arith.mulf %101, %105 : vector<8x8x4xf32>
    %107 = vector.shape_cast %106 : vector<8x8x4xf32> to vector<64x4xf32>
    %cst_47 = arith.constant dense<0.000000e+00> : vector<64x32xf32>
    %108 = tpu.matmul %107, %5, %cst_47 {dimension_numbers = #tpu.dot_dimension_numbers<[1], [0], [0], [1], [0, 0, 1, 1], [], []>} : vector<64x4xf32>, vector<4x32xf32>, vector<64x32xf32> -> vector<64x32xf32>
    %109 = vector.shape_cast %108 : vector<64x32xf32> to vector<8x8x32xf32>
    %110 = vector.shape_cast %86 : vector<8x32xf32> to vector<1x8x32xf32>
    %111 = vector.broadcast %110 : vector<1x8x32xf32> to vector<8x8x32xf32>
    %112 = arith.mulf %109, %111 : vector<8x8x32xf32>
    %cst_48 = arith.constant dense<0.000000e+00> : vector<8x32xf32>
    %113 = vector.multi_reduction <add>, %112, %cst_48 [1] : vector<8x8x32xf32> to vector<8x32xf32>
    %114 = arith.truncf %113 : vector<8x32xf32> to vector<8x32xbf16>
    %c0_49 = arith.constant 0 : index
    %c0_50 = arith.constant 0 : index
    %115 = vector.load %arg15[%c0_49, %c0_50] : memref<32x32xbf16, #tpu.memory_space<vmem>>, vector<32x32xbf16>
    %cst_51 = arith.constant dense<0.000000e+00> : vector<8x32xf32>
    %116 = tpu.matmul %114, %115, %cst_51 {dimension_numbers = #tpu.dot_dimension_numbers<[1], [0], [0], [1], [0, 0, 1, 1], [], []>} : vector<8x32xbf16>, vector<32x32xbf16>, vector<8x32xf32> -> vector<8x32xf32>
    %c0_52 = arith.constant 0 : index
    %c0_53 = arith.constant 0 : index
    %117 = vector.load %arg16[%c0_52, %c0_53] : memref<1x32xf32, #tpu.memory_space<vmem>>, vector<1x32xf32>
    %118 = vector.broadcast %117 : vector<1x32xf32> to vector<8x32xf32>
    %119 = arith.addf %116, %118 : vector<8x32xf32>
    %120 = arith.addf %72, %119 : vector<8x32xf32>
    %c0_54 = arith.constant 0 : index
    %c0_55 = arith.constant 0 : index
    %121 = vector.load %arg17[%c0_54, %c0_55] : memref<1x32xf32, #tpu.memory_space<vmem>>, vector<1x32xf32>
    %c0_56 = arith.constant 0 : index
    %c0_57 = arith.constant 0 : index
    %122 = vector.load %arg18[%c0_56, %c0_57] : memref<1x32xf32, #tpu.memory_space<vmem>>, vector<1x32xf32>
    %cst_58 = arith.constant dense<0.000000e+00> : vector<8xf32>
    %123 = vector.multi_reduction <add>, %120, %cst_58 [1] : vector<8x32xf32> to vector<8xf32>
    %124 = vector.shape_cast %123 : vector<8xf32> to vector<8x1xf32>
    %cst_59 = arith.constant 3.200000e+01 : f32
    %125 = vector.broadcast %cst_59 : f32 to vector<8x1xf32>
    %126 = arith.divf %124, %125 : vector<8x1xf32>
    %127 = vector.broadcast %126 : vector<8x1xf32> to vector<8x32xf32>
    %128 = arith.subf %120, %127 : vector<8x32xf32>
    %129 = arith.mulf %128, %128 : vector<8x32xf32>
    %cst_60 = arith.constant dense<0.000000e+00> : vector<8xf32>
    %130 = vector.multi_reduction <add>, %129, %cst_60 [1] : vector<8x32xf32> to vector<8xf32>
    %131 = vector.shape_cast %130 : vector<8xf32> to vector<8x1xf32>
    %cst_61 = arith.constant 3.200000e+01 : f32
    %132 = vector.broadcast %cst_61 : f32 to vector<8x1xf32>
    %133 = arith.divf %131, %132 : vector<8x1xf32>
    %134 = vector.broadcast %126 : vector<8x1xf32> to vector<8x32xf32>
    %135 = arith.subf %120, %134 : vector<8x32xf32>
    %cst_62 = arith.constant 9.99999974E-6 : f32
    %136 = vector.broadcast %cst_62 : f32 to vector<8x1xf32>
    %137 = arith.addf %133, %136 : vector<8x1xf32>
    %138 = math.rsqrt %137 : vector<8x1xf32>
    %139 = vector.broadcast %138 : vector<8x1xf32> to vector<8x32xf32>
    %140 = arith.mulf %135, %139 : vector<8x32xf32>
    %141 = vector.broadcast %121 : vector<1x32xf32> to vector<8x32xf32>
    %142 = arith.mulf %140, %141 : vector<8x32xf32>
    %143 = vector.broadcast %122 : vector<1x32xf32> to vector<8x32xf32>
    %144 = arith.addf %142, %143 : vector<8x32xf32>
    %145 = arith.truncf %144 : vector<8x32xf32> to vector<8x32xbf16>
    %c0_63 = arith.constant 0 : index
    %c0_64 = arith.constant 0 : index
    %146 = vector.load %arg19[%c0_63, %c0_64] : memref<32x64xbf16, #tpu.memory_space<vmem>>, vector<32x64xbf16>
    %cst_65 = arith.constant dense<0.000000e+00> : vector<8x64xf32>
    %147 = tpu.matmul %145, %146, %cst_65 {dimension_numbers = #tpu.dot_dimension_numbers<[1], [0], [0], [1], [0, 0, 1, 1], [], []>} : vector<8x32xbf16>, vector<32x64xbf16>, vector<8x64xf32> -> vector<8x64xf32>
    %c0_66 = arith.constant 0 : index
    %c0_67 = arith.constant 0 : index
    %148 = vector.load %arg20[%c0_66, %c0_67] : memref<1x64xf32, #tpu.memory_space<vmem>>, vector<1x64xf32>
    %149 = vector.broadcast %148 : vector<1x64xf32> to vector<8x64xf32>
    %150 = arith.addf %147, %149 : vector<8x64xf32>
    %cst_68 = arith.constant 0.000000e+00 : f32
    %151 = vector.broadcast %cst_68 : f32 to vector<8x64xf32>
    %152 = arith.maximumf %150, %151 : vector<8x64xf32>
    %153 = arith.truncf %152 : vector<8x64xf32> to vector<8x64xbf16>
    %c0_69 = arith.constant 0 : index
    %c0_70 = arith.constant 0 : index
    %154 = vector.load %arg21[%c0_69, %c0_70] : memref<64x32xbf16, #tpu.memory_space<vmem>>, vector<64x32xbf16>
    %cst_71 = arith.constant dense<0.000000e+00> : vector<8x32xf32>
    %155 = tpu.matmul %153, %154, %cst_71 {dimension_numbers = #tpu.dot_dimension_numbers<[1], [0], [0], [1], [0, 0, 1, 1], [], []>} : vector<8x64xbf16>, vector<64x32xbf16>, vector<8x32xf32> -> vector<8x32xf32>
    %c0_72 = arith.constant 0 : index
    %c0_73 = arith.constant 0 : index
    %156 = vector.load %arg22[%c0_72, %c0_73] : memref<1x32xf32, #tpu.memory_space<vmem>>, vector<1x32xf32>
    %157 = vector.broadcast %156 : vector<1x32xf32> to vector<8x32xf32>
    %158 = arith.addf %155, %157 : vector<8x32xf32>
    %159 = arith.addf %144, %158 : vector<8x32xf32>
    %c0_74 = arith.constant 0 : index
    %c0_75 = arith.constant 0 : index
    %160 = vector.load %arg23[%c0_74, %c0_75] : memref<1x32xf32, #tpu.memory_space<vmem>>, vector<1x32xf32>
    %c0_76 = arith.constant 0 : index
    %c0_77 = arith.constant 0 : index
    %161 = vector.load %arg24[%c0_76, %c0_77] : memref<1x32xf32, #tpu.memory_space<vmem>>, vector<1x32xf32>
    %cst_78 = arith.constant dense<0.000000e+00> : vector<8xf32>
    %162 = vector.multi_reduction <add>, %159, %cst_78 [1] : vector<8x32xf32> to vector<8xf32>
    %163 = vector.shape_cast %162 : vector<8xf32> to vector<8x1xf32>
    %cst_79 = arith.constant 3.200000e+01 : f32
    %164 = vector.broadcast %cst_79 : f32 to vector<8x1xf32>
    %165 = arith.divf %163, %164 : vector<8x1xf32>
    %166 = vector.broadcast %165 : vector<8x1xf32> to vector<8x32xf32>
    %167 = arith.subf %159, %166 : vector<8x32xf32>
    %168 = arith.mulf %167, %167 : vector<8x32xf32>
    %cst_80 = arith.constant dense<0.000000e+00> : vector<8xf32>
    %169 = vector.multi_reduction <add>, %168, %cst_80 [1] : vector<8x32xf32> to vector<8xf32>
    %170 = vector.shape_cast %169 : vector<8xf32> to vector<8x1xf32>
    %cst_81 = arith.constant 3.200000e+01 : f32
    %171 = vector.broadcast %cst_81 : f32 to vector<8x1xf32>
    %172 = arith.divf %170, %171 : vector<8x1xf32>
    %173 = vector.broadcast %165 : vector<8x1xf32> to vector<8x32xf32>
    %174 = arith.subf %159, %173 : vector<8x32xf32>
    %cst_82 = arith.constant 9.99999974E-6 : f32
    %175 = vector.broadcast %cst_82 : f32 to vector<8x1xf32>
    %176 = arith.addf %172, %175 : vector<8x1xf32>
    %177 = math.rsqrt %176 : vector<8x1xf32>
    %178 = vector.broadcast %177 : vector<8x1xf32> to vector<8x32xf32>
    %179 = arith.mulf %174, %178 : vector<8x32xf32>
    %180 = vector.broadcast %160 : vector<1x32xf32> to vector<8x32xf32>
    %181 = arith.mulf %179, %180 : vector<8x32xf32>
    %182 = vector.broadcast %161 : vector<1x32xf32> to vector<8x32xf32>
    %183 = arith.addf %181, %182 : vector<8x32xf32>
    %c0_83 = arith.constant 0 : index
    %c0_84 = arith.constant 0 : index
    %c0_85 = arith.constant 0 : index
    %184 = vector.load %arg25[%c0_83, %c0_84, %c0_85] : memref<1x8x32xf32, #tpu.memory_space<vmem>>, vector<1x8x32xf32>
    %185 = vector.shape_cast %184 : vector<1x8x32xf32> to vector<8x32xf32>
    %186 = vector.shape_cast %183 : vector<8x32xf32> to vector<1x8x32xf32>
    tpu.vector_store %arg25[%c0_83, %c0_84, %c0_85], %186 {strides = array<i32>} : memref<1x8x32xf32, #tpu.memory_space<vmem>>, vector<1x8x32xf32>,
    return
  }
  func.func @transform_0(%arg0: i32) -> (i32, i32, i32) {
    %c0_i32 = arith.constant 0 : i32
    %c0_i32_0 = arith.constant 0 : i32
    %c0_i32_1 = arith.constant 0 : i32
    return %arg0, %c0_i32, %c0_i32_0 : i32, i32, i32
  }
  func.func @transform_1(%arg0: i32) -> (i32, i32, i32) {
    %c0_i32 = arith.constant 0 : i32
    %c0_i32_0 = arith.constant 0 : i32
    %c0_i32_1 = arith.constant 0 : i32
    return %arg0, %c0_i32, %c0_i32_0 : i32, i32, i32
  }
  func.func @transform_2(%arg0: i32) -> (i32, i32) {
    %c0_i32 = arith.constant 0 : i32
    %c0_i32_0 = arith.constant 0 : i32
    %c0_i32_1 = arith.constant 0 : i32
    return %c0_i32, %c0_i32_0 : i32, i32
  }
  func.func @transform_3(%arg0: i32) -> (i32, i32) {
    %c0_i32 = arith.constant 0 : i32
    %c0_i32_0 = arith.constant 0 : i32
    %c0_i32_1 = arith.constant 0 : i32
    return %c0_i32, %c0_i32_0 : i32, i32
  }
  func.func @transform_4(%arg0: i32) -> (i32, i32) {
    %c0_i32 = arith.constant 0 : i32
    %c0_i32_0 = arith.constant 0 : i32
    %c0_i32_1 = arith.constant 0 : i32
    return %c0_i32, %c0_i32_0 : i32, i32
  }
  func.func @transform_5(%arg0: i32) -> (i32, i32) {
    %c0_i32 = arith.constant 0 : i32
    %c0_i32_0 = arith.constant 0 : i32
    %c0_i32_1 = arith.constant 0 : i32
    return %c0_i32, %c0_i32_0 : i32, i32
  }
  func.func @transform_6(%arg0: i32) -> (i32, i32) {
    %c0_i32 = arith.constant 0 : i32
    %c0_i32_0 = arith.constant 0 : i32
    %c0_i32_1 = arith.constant 0 : i32
    return %c0_i32, %c0_i32_0 : i32, i32
  }
  func.func @transform_7(%arg0: i32) -> (i32, i32) {
    %c0_i32 = arith.constant 0 : i32
    %c0_i32_0 = arith.constant 0 : i32
    %c0_i32_1 = arith.constant 0 : i32
    return %c0_i32, %c0_i32_0 : i32, i32
  }
  func.func @transform_8(%arg0: i32) -> (i32, i32) {
    %c0_i32 = arith.constant 0 : i32
    %c0_i32_0 = arith.constant 0 : i32
    %c0_i32_1 = arith.constant 0 : i32
    return %c0_i32, %c0_i32_0 : i32, i32
  }
  func.func @transform_9(%arg0: i32) -> (i32, i32) {
    %c0_i32 = arith.constant 0 : i32
    %c0_i32_0 = arith.constant 0 : i32
    %c0_i32_1 = arith.constant 0 : i32
    return %c0_i32, %c0_i32_0 : i32, i32
  }
  func.func @transform_10(%arg0: i32) -> (i32, i32) {
    %c0_i32 = arith.constant 0 : i32
    %c0_i32_0 = arith.constant 0 : i32
    %c0_i32_1 = arith.constant 0 : i32
    return %c0_i32, %c0_i32_0 : i32, i32
  }
  func.func @transform_11(%arg0: i32) -> (i32, i32) {
    %c0_i32 = arith.constant 0 : i32
    %c0_i32_0 = arith.constant 0 : i32
    %c0_i32_1 = arith.constant 0 : i32
    return %c0_i32, %c0_i32_0 : i32, i32
  }
  func.func @transform_12(%arg0: i32) -> (i32, i32) {
    %c0_i32 = arith.constant 0 : i32
    %c0_i32_0 = arith.constant 0 : i32
    %c0_i32_1 = arith.constant 0 : i32
    return %c0_i32, %c0_i32_0 : i32, i32
  }
  func.func @transform_13(%arg0: i32) -> (i32, i32) {
    %c0_i32 = arith.constant 0 : i32
    %c0_i32_0 = arith.constant 0 : i32
    %c0_i32_1 = arith.constant 0 : i32
    return %c0_i32, %c0_i32_0 : i32, i32
  }
  func.func @transform_14(%arg0: i32) -> (i32, i32) {
    %c0_i32 = arith.constant 0 : i32
    %c0_i32_0 = arith.constant 0 : i32
    %c0_i32_1 = arith.constant 0 : i32
    return %c0_i32, %c0_i32_0 : i32, i32
  }
  func.func @transform_15(%arg0: i32) -> (i32, i32) {
    %c0_i32 = arith.constant 0 : i32
    %c0_i32_0 = arith.constant 0 : i32
    %c0_i32_1 = arith.constant 0 : i32
    return %c0_i32, %c0_i32_0 : i32, i32
  }
  func.func @transform_16(%arg0: i32) -> (i32, i32) {
    %c0_i32 = arith.constant 0 : i32
    %c0_i32_0 = arith.constant 0 : i32
    %c0_i32_1 = arith.constant 0 : i32
    return %c0_i32, %c0_i32_0 : i32, i32
  }
  func.func @transform_17(%arg0: i32) -> (i32, i32) {
    %c0_i32 = arith.constant 0 : i32
    %c0_i32_0 = arith.constant 0 : i32
    %c0_i32_1 = arith.constant 0 : i32
    return %c0_i32, %c0_i32_0 : i32, i32
  }
  func.func @transform_18(%arg0: i32) -> (i32, i32) {
    %c0_i32 = arith.constant 0 : i32
    %c0_i32_0 = arith.constant 0 : i32
    %c0_i32_1 = arith.constant 0 : i32
    return %c0_i32, %c0_i32_0 : i32, i32
  }
  func.func @transform_19(%arg0: i32) -> (i32, i32) {
    %c0_i32 = arith.constant 0 : i32
    %c0_i32_0 = arith.constant 0 : i32
    %c0_i32_1 = arith.constant 0 : i32
    return %c0_i32, %c0_i32_0 : i32, i32
  }
  func.func @transform_20(%arg0: i32) -> (i32, i32) {
    %c0_i32 = arith.constant 0 : i32
    %c0_i32_0 = arith.constant 0 : i32
    %c0_i32_1 = arith.constant 0 : i32
    return %c0_i32, %c0_i32_0 : i32, i32
  }
  func.func @transform_21(%arg0: i32) -> (i32, i32) {
    %c0_i32 = arith.constant 0 : i32
    %c0_i32_0 = arith.constant 0 : i32
    %c0_i32_1 = arith.constant 0 : i32
    return %c0_i32, %c0_i32_0 : i32, i32
  }
  func.func @transform_22(%arg0: i32) -> (i32, i32) {
    %c0_i32 = arith.constant 0 : i32
    %c0_i32_0 = arith.constant 0 : i32
    %c0_i32_1 = arith.constant 0 : i32
    return %c0_i32, %c0_i32_0 : i32, i32
  }
  func.func @transform_23(%arg0: i32) -> (i32, i32) {
    %c0_i32 = arith.constant 0 : i32
    %c0_i32_0 = arith.constant 0 : i32
    %c0_i32_1 = arith.constant 0 : i32
    return %c0_i32, %c0_i32_0 : i32, i32
  }
  func.func @transform_24(%arg0: i32) -> (i32, i32, i32) {
    %c0_i32 = arith.constant 0 : i32
    %c0_i32_0 = arith.constant 0 : i32
    %c0_i32_1 = arith.constant 0 : i32
    return %arg0, %c0_i32, %c0_i32_0 : i32, i32, i32
  }
}

</mosaic_0001>

<bundles_post_ra>
// kernel: tpu_custom_call.1
= control target key start
LH: loop header
LB: loop body
LE: loop exit
PB: predicated region body
PF: predicated region fallthrough
CT: control target
= control target key end

     0   :  { %s4536_s0 = inlined_call_operand.vmem [shape: f32[2,8,32], index: 0, kind: input, shape index: {}]   ;;  %s4537_s1 = inlined_call_operand.vmem [shape: f32[2,8,32], index: 1, kind: input, shape index: {}]   ;;  %s4538_s2 = inlined_call_operand.vmem [shape: f32[32,4], index: 2, kind: input, shape index: {}]   ;;  %s4539_s3 = inlined_call_operand.hbm [shape: f32[4,32], index: 3, kind: input, shape index: {}]   ;;  %s4540_s4 = inlined_call_operand.vmem [shape: bf16[32,96], index: 4, kind: input, shape index: {}]   ;;  %s4541_s5 = inlined_call_operand.hbm [shape: f32[1,96], index: 5, kind: input, shape index: {}]   ;;  %s4542_s6 = inlined_call_operand.vmem [shape: bf16[32,32], index: 6, kind: input, shape index: {}]   ;;  %s4543_s7 = inlined_call_operand.hbm [shape: f32[1,32], index: 7, kind: input, shape index: {}]   ;;  %s4544_s8 = inlined_call_operand.hbm [shape: f32[1,32], index: 8, kind: input, shape index: {}]   ;;  %s4545_s9 = inlined_call_operand.hbm [shape: f32[1,32], index: 9, kind: input, shape index: {}]   ;;  %s4546_s10 = inlined_call_operand.vmem [shape: bf16[32,32], index: 10, kind: input, shape index: {}]   ;;  %s4547_s11 = inlined_call_operand.hbm [shape: f32[1,32], index: 11, kind: input, shape index: {}]   ;;  %s4548_s12 = inlined_call_operand.vmem [shape: bf16[32,64], index: 12, kind: input, shape index: {}]   ;;  %s4549_s13 = inlined_call_operand.hbm [shape: f32[1,64], index: 13, kind: input, shape index: {}]   ;;  %s4550_s14 = inlined_call_operand.vmem [shape: bf16[32,32], index: 14, kind: input, shape index: {}]   ;;  %s4551_s15 = inlined_call_operand.hbm [shape: f32[1,32], index: 15, kind: input, shape index: {}]   ;;  %s4552_s16 = inlined_call_operand.hbm [shape: f32[1,32], index: 16, kind: input, shape index: {}]   ;;  %s4553_s17 = inlined_call_operand.vmem [shape: f32[1,32], index: 17, kind: input, shape index: {}]   ;;  %s4554_s18 = inlined_call_operand.vmem [shape: bf16[32,64], index: 18, kind: input, shape index: {}]   ;;  %s4555_s19 = inlined_call_operand.vmem [shape: f32[1,64], index: 19, kind: input, shape index: {}]   ;;  %s4556_s20 = inlined_call_operand.vmem [shape: bf16[64,32], index: 20, kind: input, shape index: {}]   ;;  %s4557_s21 = inlined_call_operand.vmem [shape: f32[1,32], index: 21, kind: input, shape index: {}]   ;;  %s4558_s22 = inlined_call_operand.vmem [shape: f32[1,32], index: 22, kind: input, shape index: {}]   ;;  %s4559_s23 = inlined_call_operand.vmem [shape: f32[1,32], index: 23, kind: input, shape index: {}]   ;;  %s4560_s24 = inlined_call_operand.hbm [shape: f32[2,8,32], index: 24, kind: output, shape index: {}]  }
   0x1   :  { %4583 = sst [smem:[#allocation32_spill]] %s4536_s0 }
   0x2   :  { %4584 = sst [smem:[#allocation33_spill]] %s4537_s1 }
   0x3   :  { %4585 = sst [smem:[#allocation34_spill]] %s4538_s2 }
   0x4   :  { %4586 = sst [smem:[#allocation35_spill]] %s4539_s3 }
   0x5   :  { %4587 = sst [smem:[#allocation36_spill]] %s4540_s4 }
   0x6   :  { %4588 = sst [smem:[#allocation37_spill]] %s4541_s5 }
   0x7   :  { %4589 = sst [smem:[#allocation38_spill]] %s4542_s6 }
   0x8   :  { %4590 = sst [smem:[#allocation39_spill]] %s4543_s7 }
   0x9   :  { %4591 = sst [smem:[#allocation40_spill]] %s4544_s8 }
   0xa   :  { %4592 = sst [smem:[#allocation41_spill]] %s4545_s9 }
   0xb   :  { %4593 = sst [smem:[#allocation42_spill]] %s4546_s10 }
   0xc   :  { %4594 = sst [smem:[#allocation43_spill]] %s4547_s11 }
   0xd   :  { %4595 = sst [smem:[#allocation44_spill]] %s4551_s15 }
   0xe   :  { %4596 = sst [smem:[#allocation45_spill]] %s4558_s22 }
   0xf   :  { %4597 = sst [smem:[#allocation46_spill]] %s4559_s23 }
  0x10   :  { %4598 = sst [smem:[#allocation47_spill]] %s4560_s24 }
  0x11   :  { %29 = vsyncpa [#allocation3], 0 }
  0x12   :  { %30 = vsyncpa [#allocation6], 0 }
  0x13   :  { %31 = vsyncpa [#allocation9], 0 }
  0x14   :  { %32 = vsyncpa [#allocation12], 0 }
  0x15   :  { %33 = vsyncpa [#allocation15], 0 }
  0x16   :  { %34 = vsyncpa [#allocation4], 0 }
  0x17   :  { %36 = vsyncpa [#allocation4 + $0x1], 0  ;;  %s3873_s5 = smov 0   ;;  %s3875_s26 = smov 0  }
  0x18   :  { %s3877_s27 = smov 0   ;;  %s3879_s28 = smov 0  }
  0x19 LB: > { %4599 = sst [smem:[#allocation24_spill]] %s3719_s5  ;;  %s3894_s6 = sadd.s32 4294967295, %s3731_s28   ;;  %s3731_s28 = sphi %s3879_s28, %s4647_s28   ;;  %s3727_s27 = sphi %s3877_s27, %s4650_s27   ;;  %s3723_s26 = sphi %s3875_s26, %s4649_s26   ;;  %s3719_s5 = sphi %s3873_s5, %s4648_s5  }
  0x1a   : > { %4600 = sst [smem:[#allocation25_spill]] %s3723_s26  ;;  %s2868_s2 = sadd.s32 4294967294, %s3731_s28  }
  0x1b   : > { %4601 = sst [smem:[#allocation26_spill]] %s3727_s27  ;;  %s3898_s29 = sadd.s32 1, %s3731_s28  }
  0x1c   : > { %4602 = sst [smem:[#allocation27_spill]] %s3731_s28  ;;  %s563_s0 = sadd.s32 1, %s3727_s27 }
  0x1d   : > { %4603 = sst [smem:[#allocation28_spill]] %s3898_s29  ;;  %s560_s7 = ssub.s32 %s3731_s28, %s3898_s29 }
  0x1e   : > { %p573_p0 = scmp.ne.s32.totalorder %s3727_s27, %s3723_s26  ;;  %p561_p1 = scmp.eq.s32.totalorder %s560_s7, 0 }
  0x1f   : > { %p574_p2 = scmp.eq.s32.totalorder %s3894_s6, 1  ;;  %p579_p3 = scmp.ne.s32.totalorder %s3723_s26, %s3719_s5 }
  0x20   : > { %p580_p4 = scmp.eq.s32.totalorder %s2868_s2, 1  ;;  %p2869_p7 = scmp.ge.s32.totalorder %s3731_s28, 1 }
  0x21   : > { %s3909_s30 = scalar_select %p561_p1, %s3727_s27, %s563_s0  }
  0x22   : > { %p3911_p5 = por %p574_p2, %p573_p0  ;;  %p3915_p6 = por %p580_p4, %p579_p3 }
  0x23   : > { %4604 = sst [smem:[#allocation29_spill]] %s3909_s30  ;;  %p587_p8 = scmp.lt.s32.totalorder %s3731_s28, 3 }
  0x24   : > { %s4605_s3 = scalar_select %p3911_p5, 1, 0 }
  0x25   : > { %s4607_s25 = scalar_select %p3915_p6, 1, 0 }
  0x26   : > { %4606 = sst [smem:[#allocation30_spill]] %s4605_s3  ;;  %p4575_p9 = scmp.eq.s32.totalorder %s3894_s6, 0 }
  0x27   : > { %4608 = sst [smem:[#allocation31_spill]] %s4607_s25  ;;  %p3922_p10 = pnand %p2869_p7, %p587_p8 }
  0x28   : > { %s3733_s4 = smov [#allocation5]   ;;  %s3734_s2 = smov [#allocation8]  }
  0x29   : > { %s4609_s8 = scalar_select %p3922_p10, 1, 0 }
  0x2a   : > { %s617_s1 = sshll.u32 %s3733_s4, 4  ;;  %p3214_p11 = pneg %p3922_p10  ;;  %s618_s1 = int_to_ptr.vmem [resolvable:$true] %s617_s1 }
  0x2b   : > { %s642_s0 = sshll.u32 %s3734_s2, 4  ;;  %s3735_s30 = smov [#allocation11]   ;;  %s3934_s0 = int_to_ptr.vmem [resolvable:$true] %s642_s0 }
  0x2c   : > { %p3930_p12 = pnand %p4575_p9, %p3214_p11  ;;  %s667_s27 = sshll.u32 %s3735_s30, 4  ;;  %s3936_s27 = int_to_ptr.vmem [resolvable:$true] %s667_s27 }
  0x2d   : > { %s4611_s4 = sld [smem:[#allocation37_spill]] }
  0x2e   : > { %p3946_p0 = pneg %p3930_p12 }
  0x33   : > { %s3397_s5 = scalar_lea.hbm %s4611_s4, 16 }
  0x34   : > { %p3398_p13 = scmp.ne.s32.totalorder %s4611_s4, %s3397_s5  ;;  %p3404_p3 = scmp.lt.u32.totalorder %s3397_s5, %s4611_s4 }
  0x36   : > { %p3400_p1 = pnand %p3946_p0, %p3398_p13 }
  0x38   : > { %p3401_p2 = pneg %p3400_p1 }
  0x3a   : > { %p3406_p4 = pnand %p3404_p3, %p3401_p2 }
  0x3c   : > { %3409 = shalt.err (!%p3406_p4)
}
  0x3d   : > { %s3410_s29 = scalar_lea.vmem %s618_s1, 16  ;;  %s3417_s24 = scalar_lea.vmem %s618_s1, 32 }
  0x3e   : > { %p3411_p7 = scmp.ne.s32.totalorder %s618_s1, %s3410_s29  ;;  %p3418_p9 = scmp.lt.s32.totalorder %s618_s1, %s618_s1 }
  0x3f   : > { %p3419_p6 = scmp.lt.s32.totalorder %s3417_s24, %s3410_s29 }
  0x40   : > { %p3413_p8 = pnand %p3411_p7, %p3946_p0 }
  0x41   : > { %p3420_p5 = por %p3419_p6, %p3418_p9 }
  0x42   : > { %p3414_p11 = pneg %p3413_p8 }
  0x44   : > { %p3421_p10 = pnand %p3420_p5, %p3414_p11 }
  0x46   : > { %3424 = shalt.err (!%p3421_p10)
}
  0x47   : > { %3220 = dma.hbm_to_vmem [thread:$0]  (!%p3930_p12), %s4611_s4, 16, %s618_s1, [#allocation6]  }
  0x48   : > { %s4613_s30 = sld [smem:[#allocation40_spill]] }
  0x4e   : > { %s3425_s22 = scalar_lea.hbm %s4613_s30, 16 }
  0x4f   : > { %p3426_p13 = scmp.ne.s32.totalorder %s4613_s30, %s3425_s22  ;;  %p3432_p5 = scmp.lt.u32.totalorder %s3425_s22, %s4613_s30 }
  0x51   : > { %p3428_p1 = pnand %p3426_p13, %p3946_p0 }
  0x53   : > { %p3429_p6 = pneg %p3428_p1 }
  0x55   : > { %p3434_p9 = pnand %p3432_p5, %p3429_p6 }
  0x57   : > { %3437 = shalt.err (!%p3434_p9)
}
  0x58   : > { %s3438_s1 = scalar_lea.vmem %s3934_s0, 16  ;;  %s3445_s26 = scalar_lea.vmem %s3934_s0, 32 }
  0x59   : > { %p3439_p10 = scmp.ne.s32.totalorder %s3934_s0, %s3438_s1  ;;  %p3446_p4 = scmp.lt.s32.totalorder %s3934_s0, %s3934_s0 }
  0x5a   : > { %p3447_p7 = scmp.lt.s32.totalorder %s3445_s26, %s3438_s1 }
  0x5b   : > { %p3441_p2 = pnand %p3439_p10, %p3946_p0 }
  0x5c   : > { %p3448_p8 = por %p3447_p7, %p3446_p4 }
  0x5d   : > { %p3442_p3 = pneg %p3441_p2 }
  0x5f   : > { %p3449_p11 = pnand %p3448_p8, %p3442_p3 }
  0x61   : > { %3452 = shalt.err (!%p3449_p11)
}
  0x62   : > { %3226 = dma.hbm_to_vmem [thread:$0]  (!%p3930_p12), %s4613_s30, 16, %s3934_s0, [#allocation9]  }
  0x63   : > { %s4614_s11 = sld [smem:[#allocation43_spill]] }
  0x69   : > { %s3453_s23 = scalar_lea.hbm %s4614_s11, 16 }
  0x6a   : > { %p3454_p13 = scmp.ne.s32.totalorder %s4614_s11, %s3453_s23  ;;  %p3460_p5 = scmp.lt.u32.totalorder %s3453_s23, %s4614_s11 }
  0x6c   : > { %p3456_p1 = pnand %p3454_p13, %p3946_p0 }
  0x6e   : > { %p3457_p6 = pneg %p3456_p1 }
  0x70   : > { %p3462_p9 = pnand %p3460_p5, %p3457_p6 }
  0x72   : > { %3465 = shalt.err (!%p3462_p9)
}
  0x73   : > { %s3466_s0 = scalar_lea.vmem %s3936_s27, 16  ;;  %s3473_s26 = scalar_lea.vmem %s3936_s27, 32 }
  0x74   : > { %p3467_p10 = scmp.ne.s32.totalorder %s3936_s27, %s3466_s0  ;;  %p3474_p4 = scmp.lt.s32.totalorder %s3936_s27, %s3936_s27 }
  0x75   : > { %p3475_p7 = scmp.lt.s32.totalorder %s3473_s26, %s3466_s0 }
  0x76   : > { %p3469_p2 = pnand %p3467_p10, %p3946_p0 }
  0x77   : > { %p3476_p8 = por %p3475_p7, %p3474_p4 }
  0x78   : > { %p3470_p3 = pneg %p3469_p2 }
  0x7a   : > { %p3477_p11 = pnand %p3476_p8, %p3470_p3 }
  0x7c   : > { %3480 = shalt.err (!%p3477_p11)
}
  0x7d   : > { %3232 = dma.hbm_to_vmem [thread:$0]  (!%p3930_p12), %s4614_s11, 16, %s3936_s27, [#allocation12]  }
  0x7e   : > { %s3736_s28 = smov [#allocation14]   ;;  %s3737_s23 = smov [#allocation2]  }
  0x7f   : > { %s695_s25 = sshll.u32 %s3736_s28, 4  ;;  %s603_s5 = sshll.u32 %s3737_s23, 4  ;;  %s696_s25 = int_to_ptr.vmem [resolvable:$true] %s695_s25  ;;  %s604_s5 = int_to_ptr.vmem [resolvable:$true] %s603_s5 }
  0x80   : > { %s4615_s15 = sld [smem:[#allocation44_spill]] }
  0x86   : > { %s3481_s1 = scalar_lea.hbm %s4615_s15, 16 }
  0x87   : > { %p3482_p13 = scmp.ne.s32.totalorder %s4615_s15, %s3481_s1  ;;  %p3488_p5 = scmp.lt.u32.totalorder %s3481_s1, %s4615_s15 }
  0x89   : > { %p3484_p1 = pnand %p3482_p13, %p3946_p0 }
  0x8b   : > { %p3485_p6 = pneg %p3484_p1 }
  0x8d   : > { %p3490_p9 = pnand %p3488_p5, %p3485_p6 }
  0x8f   : > { %3493 = shalt.err (!%p3490_p9)
}
  0x90   : > { %s3494_s27 = scalar_lea.vmem %s696_s25, 16  ;;  %s3501_s3 = scalar_lea.vmem %s696_s25, 32 }
  0x91   : > { %p3495_p10 = scmp.ne.s32.totalorder %s696_s25, %s3494_s27  ;;  %p3502_p4 = scmp.lt.s32.totalorder %s696_s25, %s696_s25 }
  0x92   : > { %p3503_p7 = scmp.lt.s32.totalorder %s3501_s3, %s3494_s27 }
  0x93   : > { %p3497_p2 = pnand %p3495_p10, %p3946_p0 }
  0x94   : > { %p3504_p8 = por %p3503_p7, %p3502_p4 }
  0x95   : > { %p3498_p3 = pneg %p3497_p2 }
  0x97   : > { %p3505_p11 = pnand %p3504_p8, %p3498_p3 }
  0x99   : > { %3508 = shalt.err (!%p3505_p11)
}
  0x9a   : > { %3238 = dma.hbm_to_vmem [thread:$0]  (!%p3930_p12), %s4615_s15, 16, %s696_s25, [#allocation15]  }
  0x9b   : > { %s4616_s24 = sld [smem:[#allocation35_spill]] }
  0xa1   : > { %s3509_s1 = scalar_lea.hbm %s4616_s24, 64 }
  0xa2   : > { %p3510_p13 = scmp.ne.s32.totalorder %s4616_s24, %s3509_s1  ;;  %p3516_p5 = scmp.lt.u32.totalorder %s3509_s1, %s4616_s24 }
  0xa4   : > { %p3512_p1 = pnand %p3510_p13, %p3946_p0 }
  0xa6   : > { %p3513_p6 = pneg %p3512_p1 }
  0xa8   : > { %p3518_p9 = pnand %p3516_p5, %p3513_p6 }
  0xaa   : > { %3521 = shalt.err (!%p3518_p9)
}
  0xab   : > { %s3522_s3 = scalar_lea.vmem %s604_s5, 64  ;;  %p3530_p4 = scmp.lt.s32.totalorder %s604_s5, %s604_s5 }
  0xac   : > { %p3523_p10 = scmp.ne.s32.totalorder %s604_s5, %s3522_s3  ;;  %p3531_p7 = scmp.lt.s32.totalorder %s3522_s3, %s3522_s3 }
  0xae   : > { %p3525_p2 = pnand %p3523_p10, %p3946_p0  ;;  %p3532_p8 = por %p3531_p7, %p3530_p4 }
  0xb0   : > { %p3526_p3 = pneg %p3525_p2 }
  0xb2   : > { %p3533_p11 = pnand %p3532_p8, %p3526_p3 }
  0xb4   : > { %3536 = shalt.err (!%p3533_p11)
}
  0xb5   : > { %3217 = dma.hbm_to_vmem [thread:$0]  (!%p3930_p12), %s4616_s24, 64, %s604_s5, [#allocation3]  }
  0xb6   : > { %s3738_s23 = smov [#allocation7]   ;;  %s3739_s29 = smov [#allocation10]  }
  0xb7   : > { %s631_s4 = sshll.u32 %s3738_s23, 4  ;;  %s653_s1 = sshll.u32 %s3739_s29, 4  ;;  %s632_s4 = int_to_ptr.vmem [resolvable:$true] %s631_s4  ;;  %s654_s1 = int_to_ptr.vmem [resolvable:$true] %s653_s1 }
  0xb8   : > { %s4617_s22 = sld [smem:[#allocation39_spill]] }
  0xbe   : > { %s3537_s27 = scalar_lea.hbm %s4617_s22, 16 }
  0xbf   : > { %p3538_p13 = scmp.ne.s32.totalorder %s4617_s22, %s3537_s27  ;;  %p3544_p5 = scmp.lt.u32.totalorder %s3537_s27, %s4617_s22 }
  0xc1   : > { %p3540_p1 = pnand %p3538_p13, %p3946_p0 }
  0xc3   : > { %p3541_p6 = pneg %p3540_p1 }
  0xc5   : > { %p3546_p9 = pnand %p3544_p5, %p3541_p6 }
  0xc7   : > { %3549 = shalt.err (!%p3546_p9)
}
  0xc8   : > { %s3550_s5 = scalar_lea.vmem %s632_s4, 16  ;;  %s3557_s28 = scalar_lea.vmem %s632_s4, 32 }
  0xc9   : > { %p3551_p10 = scmp.ne.s32.totalorder %s632_s4, %s3550_s5  ;;  %p3558_p4 = scmp.lt.s32.totalorder %s632_s4, %s632_s4 }
  0xca   : > { %p3559_p7 = scmp.lt.s32.totalorder %s3557_s28, %s3550_s5 }
  0xcb   : > { %p3553_p2 = pnand %p3551_p10, %p3946_p0 }
  0xcc   : > { %p3560_p8 = por %p3559_p7, %p3558_p4 }
  0xcd   : > { %p3554_p3 = pneg %p3553_p2 }
  0xcf   : > { %p3561_p11 = pnand %p3560_p8, %p3554_p3 }
  0xd1   : > { %3564 = shalt.err (!%p3561_p11)
}
  0xd2   : > { %3223 = dma.hbm_to_vmem [thread:$0]  (!%p3930_p12), %s4617_s22, 16, %s632_s4, [#allocation6]  }
  0xd3   : > { %s4618_s9 = sld [smem:[#allocation41_spill]] }
  0xd9   : > { %s3565_s0 = scalar_lea.hbm %s4618_s9, 16 }
  0xda   : > { %p3566_p13 = scmp.ne.s32.totalorder %s4618_s9, %s3565_s0  ;;  %p3572_p5 = scmp.lt.u32.totalorder %s3565_s0, %s4618_s9 }
  0xdc   : > { %p3568_p1 = pnand %p3566_p13, %p3946_p0 }
  0xde   : > { %p3569_p6 = pneg %p3568_p1 }
  0xe0   : > { %p3574_p9 = pnand %p3572_p5, %p3569_p6 }
  0xe2   : > { %3577 = shalt.err (!%p3574_p9)
}
  0xe3   : > { %s3578_s5 = scalar_lea.vmem %s654_s1, 16  ;;  %s3585_s4 = scalar_lea.vmem %s654_s1, 32 }
  0xe4   : > { %p3579_p10 = scmp.ne.s32.totalorder %s654_s1, %s3578_s5  ;;  %p3586_p4 = scmp.lt.s32.totalorder %s654_s1, %s654_s1 }
  0xe5   : > { %p3587_p7 = scmp.lt.s32.totalorder %s3585_s4, %s3578_s5 }
  0xe6   : > { %p3581_p2 = pnand %p3579_p10, %p3946_p0 }
  0xe7   : > { %p3588_p8 = por %p3587_p7, %p3586_p4 }
  0xe8   : > { %p3582_p3 = pneg %p3581_p2 }
  0xea   : > { %p3589_p11 = pnand %p3588_p8, %p3582_p3 }
  0xec   : > { %3592 = shalt.err (!%p3589_p11)
}
  0xed   : > { %3229 = dma.hbm_to_vmem [thread:$0]  (!%p3930_p12), %s4618_s9, 16, %s654_s1, [#allocation9]  }
  0xee   : > { %s3740_s23 = smov [#allocation13]   ;;  %s3741_s29 = smov [#allocation16]  }
  0xef   : > { %s681_s15 = sshll.u32 %s3740_s23, 4  ;;  %s706_s0 = sshll.u32 %s3741_s29, 4  ;;  %s682_s15 = int_to_ptr.vmem [resolvable:$true] %s681_s15  ;;  %s707_s0 = int_to_ptr.vmem [resolvable:$true] %s706_s0 }
  0xf0   : > { %s3593_s3 = scalar_lea.hbm %s4549_s13, 16 }
  0xf1   : > { %p3594_p13 = scmp.ne.s32.totalorder %s4549_s13, %s3593_s3  ;;  %p3600_p5 = scmp.lt.u32.totalorder %s3593_s3, %s4549_s13 }
  0xf3   : > { %p3596_p1 = pnand %p3594_p13, %p3946_p0 }
  0xf5   : > { %p3597_p6 = pneg %p3596_p1 }
  0xf7   : > { %p3602_p9 = pnand %p3600_p5, %p3597_p6 }
  0xf9   : > { %3605 = shalt.err (!%p3602_p9)
}
  0xfa   : > { %s3606_s1 = scalar_lea.vmem %s682_s15, 16  ;;  %s3613_s11 = scalar_lea.vmem %s682_s15, 32 }
  0xfb   : > { %p3607_p10 = scmp.ne.s32.totalorder %s682_s15, %s3606_s1  ;;  %p3614_p4 = scmp.lt.s32.totalorder %s682_s15, %s682_s15 }
  0xfc   : > { %p3615_p7 = scmp.lt.s32.totalorder %s3613_s11, %s3606_s1 }
  0xfd   : > { %p3609_p2 = pnand %p3607_p10, %p3946_p0 }
  0xfe   : > { %p3616_p8 = por %p3615_p7, %p3614_p4 }
  0xff   : > { %p3610_p3 = pneg %p3609_p2 }
 0x101   : > { %p3617_p11 = pnand %p3616_p8, %p3610_p3 }
 0x103   : > { %3620 = shalt.err (!%p3617_p11)
}
 0x104   : > { %3235 = dma.hbm_to_vmem [thread:$0]  (!%p3930_p12), %s4549_s13, 16, %s682_s15, [#allocation12]  }
 0x105   : > { %s3621_s3 = scalar_lea.hbm %s4552_s16, 16 }
 0x106   : > { %p3622_p13 = scmp.ne.s32.totalorder %s4552_s16, %s3621_s3  ;;  %p3628_p5 = scmp.lt.u32.totalorder %s3621_s3, %s4552_s16 }
 0x108   : > { %p3624_p1 = pnand %p3622_p13, %p3946_p0 }
 0x10a   : > { %p3625_p6 = pneg %p3624_p1 }
 0x10c   : > { %p3630_p9 = pnand %p3628_p5, %p3625_p6 }
 0x10e   : > { %3633 = shalt.err (!%p3630_p9)
}
 0x10f   : > { %s3634_s1 = scalar_lea.vmem %s707_s0, 16  ;;  %s3641_s15 = scalar_lea.vmem %s707_s0, 32 }
 0x110   : > { %p3635_p10 = scmp.ne.s32.totalorder %s707_s0, %s3634_s1  ;;  %p3642_p4 = scmp.lt.s32.totalorder %s707_s0, %s707_s0 }
 0x111   : > { %p3643_p7 = scmp.lt.s32.totalorder %s3641_s15, %s3634_s1 }
 0x112   : > { %p3637_p2 = pnand %p3635_p10, %p3946_p0 }
 0x113   : > { %p3644_p8 = por %p3643_p7, %p3642_p4 }
 0x114   : > { %p3638_p3 = pneg %p3637_p2 }
 0x116   : > { %p3645_p11 = pnand %p3644_p8, %p3638_p3 }
 0x118   : > { %3648 = shalt.err (!%p3645_p11)
}
 0x119   : > { %3241 = dma.hbm_to_vmem [thread:$0]  (!%p3930_p12), %s4552_s16, 16, %s707_s0, [#allocation15]  }
 0x11a   : > { %p4619_p13 = scmp.ne.s32.totalorder %s4609_s8, 0 }
 0x11b   : > { %p4620_p1 = scmp.eq.s32.totalorder (!%p4619_p13), %s3894_s6, 0 }
 0x11c   : > { %754 = sbr.rel (%p4619_p13) target bundleno = 3741 (0xe9d), region = 116 }
 0x123   : > { %3694 = dma.done.wait (%p4620_p1), [#allocation3], 64   ;;  %p4621_p0 = pmov %p4620_p1 }
 0x125   : > { %3696 = vsyncadd (%p4621_p0), [#allocation3], 4294967232  ;;  %p4622_p6 = pmov %p4621_p0 }
 0x126   : > { %p4623_p5 = pmov %p4621_p0 }
 0x127   : > { %3698 = dma.done.wait (%p4622_p6), [#allocation6], 32  }
 0x128   : > { %3700 = vsyncadd (%p4623_p5), [#allocation6], 4294967264  ;;  %p4624_p9 = pmov %p4621_p0 }
 0x129   : > { %p4625_p12 = pmov %p4621_p0 }
 0x12a   : > { %3702 = dma.done.wait (%p4624_p9), [#allocation9], 32  }
 0x12b   : > { %3704 = vsyncadd (%p4625_p12), [#allocation9], 4294967264  ;;  %p4626_p10 = pmov %p4621_p0 }
 0x12c   : > { %p4627_p2 = pmov %p4621_p0 }
 0x12d   : > { %3706 = dma.done.wait (%p4626_p10), [#allocation12], 32  }
 0x12e   : > { %3708 = vsyncadd (%p4627_p2), [#allocation12], 4294967264  ;;  %p4628_p3 = pmov %p4621_p0 }
 0x12f   : > { %p4629_p4 = pmov %p4621_p0 }
 0x130   : > { %3710 = dma.done.wait (%p4628_p3), [#allocation15], 32  }
 0x131   : > { %3712 = vsyncadd (%p4629_p4), [#allocation15], 4294967264  ;;  %p855_p7 = scmp.lt.s32.totalorder %s3894_s6, 1  ;;  %v3742_v0 = vmov 0.0   ;;  %vm3743_vm0 = vmmov 0   ;;  %s4630_s29 = sld [smem:[#allocation32_spill]]  ;;  %v944_v19 = vlaneseq }
 0x132   : > { %3032 = vmatprep.subr.bf16.mxu1 %v3742_v0  ;;  %3036 = vmatprep.mubr.msk.bf16.mxu1 %vm3743_vm0, %v3742_v0  ;;  %s4631_s25 = sld [smem:[#allocation36_spill]]  ;;  %vm895_vm1 = vcmask 261120   ;;  %s4632_s15 = sld [smem:[#allocation34_spill]]  ;;  %v2893_v11 = vld [vmem:[#allocation5] ss:$0 sm:$0xff]  ;;  %vm1354_vm2 = vcmask 1043456  }
 0x133   : > { %s4145_s8 = scalar_select %p855_p7, %s3894_s6, 1  ;;  %v3746_v17 = vmov 1966171168   ;;  %v945_v21 = vshrl.u32 %v944_v19, 7  ;;  %v4215_v54 = vld [vmem:[#allocation2] sm:$0xf] }
 0x134   : > { %s3744_s27 = smov 96   ;;  %s3745_s3 = smov 64   ;;  %v942_v18 = vunpack.c.l.s4 %v3746_v17  ;;  %3060 = vmatprep.subr.msk.mxu0 %vm1354_vm2, %v4215_v54  ;;  %vm1177_vm3 = vcmask 31744   ;;  %vm1565_vm4 = vcmask 1041409   ;;  %vm1567_vm5 = vcmask 1042434  }
 0x135   : > { %s2891_s7 = sshll.u32 %s4145_s8, 3  ;;  %v4192_v28 = vsub.s32 0, %v945_v21  ;;  %3061 = vmatpush3.msk.msra.mxu0 %vm1354_vm2, %v4215_v54  ;;  %s4633_s28 = sld [smem:[#allocation38_spill]]  ;;  %vm1569_vm6 = vcmask 1043459   ;;  %vm1571_vm7 = vcmask 1044484   ;;  %vm1573_vm8 = vcmask 1045509  }
 0x136   : > { %v943_v20 = vunpack.c.0.s8 %v942_v18  ;;  %3082 = vmatprep.subr.bf16.mxu0 %v3742_v0  ;;  %vm1575_vm9 = vcmask 1046534   ;;  %vm1577_vm10 = vcmask 1047559   ;;  %s4635_s10 = sld [smem:[#allocation42_spill]]  ;;  %s4636_s11 = sld [smem:[#allocation33_spill]]  ;;  %vm2620_vm11 = vcmask 523264  }
 0x137   : > { %s858_s26 = scalar_lea.vmem %s4630_s29, %s2891_s7  ;;  %s4638_s0 = sld [smem:[#allocation30_spill]] }
 0x138   : > { %v3311_v1 = vld [vmem:[%s4631_s25] sm:$0xff]   ;;  %v3312_v2 = vld [vmem:[%s4631_s25 + $0x8] sm:$0xff]   ;;  %v868_v7 = vld [vmem:[%s4632_s15 + $0x10] sm:$0xff]  ;;  %v4187_v22 = vsub.s32 %v943_v20, %v945_v21  ;;  %s2964_s5 = sshll.u32 %s3894_s6, 7  ;;  %s3747_s6 = smov [#allocation17]  }
 0x139   : > { %3033 = vmatpush3.bf16.msra.mxu1 %v3311_v1  ;;  %v4159_v3 = vld [vmem:[%s858_s26] sm:$0xff]  ;;  %v867_v6 = vld [vmem:[%s4632_s15 + $0x8] sm:$0xff]  ;;  %v869_v9 = vld [vmem:[%s4632_s15 + $0x18] sm:$0xff] }
 0x13a   : > { %3034 = vmatprep.subr.bf16.mxu1 %v3742_v0  ;;  %v871_v4 = vpack.c.bf16 %v4159_v3, %v4159_v3  ;;  %v866_v5 = vld [vmem:[%s4632_s15] sm:$0xff]  ;;  %v4179_v10 = vpack.c.bf16 %v869_v9, %v868_v7 }
 0x13b   : > { %v4174_v8 = vpack.c.bf16 %v867_v6, %v866_v5  ;;  %s4634_s1 = smov %s4633_s28 }
 0x13c   : > { %s862_s23 = scalar_lea.vmem %s4636_s11, %s2891_s7  ;;  %s4637_s11 = sld [smem:[#allocation25_spill]] }
 0x13d   : > { %3035 = vmatpush3.bf16.msra.mxu1 %v3312_v2  ;;  %p4642_p11 = scmp.ne.s32.totalorder %s4638_s0, 0 }
 0x13e   : > { %3161 = vmatprep.subr.bf16.mxu1 %v4174_v8 }
 0x140   : > { %3037 = vmatmul.mubr.msk.bf16.vlgmr.msra.gmra.mrb[0].mxu1 %vm895_vm1, %v871_v4 }
 0x141   : > { %3163 = vmatpush3.bf16.msra.mxu1 %v4174_v8 }
 0x142   : > { %3165 = vmatprep.subr.bf16.mxu1 %v4179_v10 }
 0x145   : > { %3167 = vmatpush3.bf16.msra.mxu1 %v4179_v10 }
 0x146   : > { %3074 = vmatprep.subr.bf16.mxu1 %v3742_v0 }
 0x213   : > { %v933_v12 = vpop.f32.mrb[0].mxu1 }
 0x214   : > { %v934_v13 = vadd.f32 %v2893_v11, %v933_v12  ;;  %v3038_v14 = vpop.f32.mrb[1].mxu1 }
 0x215   : > { %v936_v15 = vpop.f32.mrb[2].mxu1 }
 0x216   : > { %1029 = vrot.lane.b32.xlu0 %v934_v13, %s3744_s27  ;;  %v3039_v16 = vpop.f32.mrb[3].mxu1  ;;  %v947_v23 = vrot.slane %v934_v13, %v4187_v22  ;;  %v940_v25 = vcombine.high %v934_v13, %v934_v13 }
 0x218   : > { %v955_v24 = vcombine.high %v947_v23, %v947_v23  ;;  %v963_v26 = vrot.slane %v947_v23, %v4187_v22  ;;  %v954_v29 = vrot.slane %v940_v25, %v4187_v22 }
 0x21a   : > { %1463 = vrot.lane.b32.xlu0 %v934_v13, %s3745_s3  ;;  %v977_v27 = vrot.slane %v955_v24, %v4187_v22  ;;  %v985_v30 = vcombine.high %v963_v26, %v963_v26  ;;  %v992_v31 = vrot.slane %v963_v26, %v4192_v28  ;;  %v956_v33 = vcombine.high %v954_v29, %v954_v29  ;;  %s4640_s3 = sld [smem:[#allocation46_spill]] }
 0x21b   : > { %v970_v39 = vrot.slane %v954_v29, %v4187_v22 }
 0x21c   : > { %v996_v32 = vrot.slane %v977_v27, %v4192_v28  ;;  %v987_v35 = vcombine.high %v977_v27, %v977_v27  ;;  %v1000_v38 = vrot.slane %v985_v30, %v4192_v28  ;;  %v984_v42 = vrot.slane %v956_v33, %v4187_v22 }
 0x21d   : > { %v1008_v43 = vrot.slane %v970_v39, %v4192_v28  ;;  %v986_v44 = vcombine.high %v970_v39, %v970_v39 }
 0x21e   : > { %v1004_v41 = vrot.slane %v987_v35, %v4192_v28  ;;  %v1012_v47 = vrot.slane %v984_v42, %v4192_v28  ;;  %v988_v48 = vcombine.high %v984_v42, %v984_v42 }
 0x21f   : > { %v1016_v49 = vrot.slane %v986_v44, %v4192_v28 }
 0x220   : > { %v1020_v52 = vrot.slane %v988_v48, %v4192_v28 }
 0x288   : > { %v1030_v34 = vpop.permute.xlu0 %1029 }
 0x289   : > { %v1032_v36 = vmul.f32 %v1030_v34, %v992_v31  ;;  %v1033_v37 = vmul.f32 %v1030_v34, %v996_v32  ;;  %v1034_v40 = vmul.f32 %v1030_v34, %v1000_v38  ;;  %v1035_v45 = vmul.f32 %v1030_v34, %v1004_v41 }
 0x28a   : > { %v1036_v46 = vmul.f32 %v1030_v34, %v1008_v43  ;;  %v1037_v50 = vmul.f32 %v1030_v34, %v1012_v47  ;;  %v1038_v51 = vmul.f32 %v1030_v34, %v1016_v49  ;;  %v1039_v53 = vmul.f32 %v1030_v34, %v1020_v52 }
 0x28b   : > { %3048 = vmatprep.mubr.msk.f32.mxu1 %vm895_vm1, %v1032_v36 }
 0x28c   : > { %3049 = vmatmul.mubr.msk.f32.vlgmr.msra.gmra.mrb[4].mxu1 %vm895_vm1, %v1033_v37 }
 0x28d   : > { %3051 = vmatprep.mubr.msk.f32.mxu1 %vm895_vm1, %v1034_v40 }
 0x290   : > { %3052 = vmatmul.mubr.msk.f32.gmra.mrb[6].mxu1 %vm895_vm1, %v1035_v45 }
 0x291   : > { %3054 = vmatprep.mubr.msk.f32.mxu1 %vm895_vm1, %v1036_v46 }
 0x294   : > { %3055 = vmatmul.mubr.msk.f32.gmra.mrb[8].mxu1 %vm895_vm1, %v1037_v50 }
 0x295   : > { %3057 = vmatprep.mubr.msk.f32.mxu1 %vm895_vm1, %v1038_v51 }
 0x298   : > { %3058 = vmatmul.mubr.msk.f32.gmra.mrb[10].mxu1 %vm895_vm1, %v1039_v53 }
 0x299   : > { %3078 = vmatprep.mubr.msk.bf16.mxu1 %vm3743_vm0, %v3742_v0 }
 0x35f   : > { %v3050_v55 = vpop.f32.mrb[4].mxu1 }
 0x360   : > { %v1170_v56 = vmul.f32 0.35355338, %v3050_v55  ;;  %v1130_v57 = vpop.f32.mrb[5].mxu1 }
 0x361   : > { %v1169_v58 = vmul.f32 0.35355338, %v1130_v57 }
 0x362   : > { %v1185_v59 = vsel %vm1177_vm3, %v1170_v56, -inf }
 0x363   : > { %v1186_v60 = vrot.slane %v1185_v59, 4  ;;  %v1178_v61 = vsel %vm1177_vm3, %v1169_v58, -inf  ;;  %v3053_v62 = vpop.f32.mrb[6].mxu1 }
 0x364   : > { %v1179_v63 = vrot.slane %v1178_v61, 4  ;;  %v1172_v1 = vmul.f32 0.35355338, %v3053_v62  ;;  %v1140_v2 = vpop.f32.mrb[7].mxu1 }
 0x365   : > { %v1187_v4 = vmax.f32 %v1185_v59, %v1186_v60  ;;  %v1171_v5 = vmul.f32 0.35355338, %v1140_v2 }
 0x366   : > { %v1180_v6 = vmax.f32 %v1178_v61, %v1179_v63  ;;  %v1199_v7 = vsel %vm1177_vm3, %v1172_v1, -inf }
 0x367   : > { %v1188_v9 = vrot.slane %v1187_v4, 2  ;;  %v1200_v11 = vrot.slane %v1199_v7, 4  ;;  %v1192_v12 = vsel %vm1177_vm3, %v1171_v5, -inf  ;;  %v3056_v13 = vpop.f32.mrb[8].mxu1 }
 0x368   : > { %v1181_v14 = vrot.slane %v1180_v6, 2  ;;  %v1193_v15 = vrot.slane %v1192_v12, 4  ;;  %v1174_v16 = vmul.f32 0.35355338, %v3056_v13  ;;  %v1150_v17 = vpop.f32.mrb[9].mxu1 }
 0x369   : > { %v1189_v18 = vmax.f32 %v1187_v4, %v1188_v9  ;;  %v1201_v19 = vmax.f32 %v1199_v7, %v1200_v11  ;;  %v1173_v20 = vmul.f32 0.35355338, %v1150_v17 }
 0x36a   : > { %v1182_v21 = vmax.f32 %v1180_v6, %v1181_v14  ;;  %v1194_v23 = vmax.f32 %v1192_v12, %v1193_v15  ;;  %v1213_v24 = vsel %vm1177_vm3, %v1174_v16, -inf }
 0x36b   : > { %v1190_v25 = vrot.slane %v1189_v18, 1  ;;  %v1202_v26 = vrot.slane %v1201_v19, 2  ;;  %v1214_v27 = vrot.slane %v1213_v24, 4  ;;  %v1206_v29 = vsel %vm1177_vm3, %v1173_v20, -inf  ;;  %v3059_v30 = vpop.f32.mrb[10].mxu1 }
 0x36c   : > { %v1183_v31 = vrot.slane %v1182_v21, 1  ;;  %v1195_v32 = vrot.slane %v1194_v23, 2  ;;  %v1207_v33 = vrot.slane %v1206_v29, 4  ;;  %v1176_v34 = vmul.f32 0.35355338, %v3059_v30  ;;  %v1160_v35 = vpop.f32.mrb[11].mxu1 }
 0x36d   : > { %v1191_v36 = vmax.f32 %v1189_v18, %v1190_v25  ;;  %v1203_v37 = vmax.f32 %v1201_v19, %v1202_v26  ;;  %v1215_v38 = vmax.f32 %v1213_v24, %v1214_v27  ;;  %v1175_v39 = vmul.f32 0.35355338, %v1160_v35 }
 0x36e   : > { %v1184_v40 = vmax.f32 %v1182_v21, %v1183_v31  ;;  %v1196_v41 = vmax.f32 %v1194_v23, %v1195_v32  ;;  %v1208_v42 = vmax.f32 %v1206_v29, %v1207_v33  ;;  %v1227_v43 = vsel %vm1177_vm3, %v1176_v34, -inf }
 0x36f   : > { %v1235_v44 = vsub.f32 %v1170_v56, %v1191_v36  ;;  %v1204_v45 = vrot.slane %v1203_v37, 1  ;;  %v1216_v46 = vrot.slane %v1215_v38, 2  ;;  %v1228_v47 = vrot.slane %v1227_v43, 4 }
 0x370   : > { %v1234_v48 = vsub.f32 %v1169_v58, %v1184_v40  ;;  %v1197_v49 = vrot.slane %v1196_v41, 1  ;;  %v1209_v50 = vrot.slane %v1208_v42, 2  ;;  %v1220_v51 = vsel %vm1177_vm3, %v1175_v39, -inf }
 0x371   : > { %v1244_v52 = vmul.f32 1.442695, %v1235_v44  ;;  %v1205_v53 = vmax.f32 %v1203_v37, %v1204_v45  ;;  %v1217_v55 = vmax.f32 %v1215_v38, %v1216_v46  ;;  %v1229_v57 = vmax.f32 %v1227_v43, %v1228_v47 }
 0x372   : > { %v1242_v59 = vmul.f32 1.442695, %v1234_v48  ;;  %v1198_v60 = vmax.f32 %v1196_v41, %v1197_v49  ;;  %v1210_v61 = vmax.f32 %v1208_v42, %v1209_v50  ;;  %v1221_v62 = vrot.slane %v1220_v51, 4 }
 0x373   : > { %3327 = vpow2.f32 %v1244_v52  ;;  %v1237_v63 = vsub.f32 %v1172_v1, %v1205_v53  ;;  %v1218_v2 = vrot.slane %v1217_v55, 1  ;;  %v1230_v56 = vrot.slane %v1229_v57, 2 }
 0x374   : > { %3329 = vpow2.f32 %v1242_v59  ;;  %v1236_v4 = vsub.f32 %v1171_v5, %v1198_v60  ;;  %v1211_v6 = vrot.slane %v1210_v61, 1  ;;  %v1222_v58 = vmax.f32 %v1220_v51, %v1221_v62 }
 0x375   : > { %v1248_v7 = vmul.f32 1.442695, %v1237_v63  ;;  %v1219_v9 = vmax.f32 %v1217_v55, %v1218_v2  ;;  %v1231_v11 = vmax.f32 %v1229_v57, %v1230_v56 }
 0x376   : > { %v1246_v12 = vmul.f32 1.442695, %v1236_v4  ;;  %v1212_v13 = vmax.f32 %v1210_v61, %v1211_v6  ;;  %v1223_v14 = vrot.slane %v1222_v58, 2 }
 0x377   : > { %3331 = vpow2.f32 %v1248_v7  ;;  %v1239_v15 = vsub.f32 %v1174_v16, %v1219_v9  ;;  %v1232_v17 = vrot.slane %v1231_v11, 1 }
 0x378   : > { %3333 = vpow2.f32 %v1246_v12  ;;  %v1238_v18 = vsub.f32 %v1173_v20, %v1212_v13  ;;  %v1224_v19 = vmax.f32 %v1222_v58, %v1223_v14 }
 0x379   : > { %v1252_v21 = vmul.f32 1.442695, %v1239_v15  ;;  %v1233_v1 = vmax.f32 %v1231_v11, %v1232_v17 }
 0x37a   : > { %v1250_v23 = vmul.f32 1.442695, %v1238_v18  ;;  %v1225_v24 = vrot.slane %v1224_v19, 1 }
 0x37b   : > { %3335 = vpow2.f32 %v1252_v21  ;;  %v1241_v5 = vsub.f32 %v1176_v34, %v1233_v1 }
 0x37c   : > { %3337 = vpow2.f32 %v1250_v23  ;;  %v1226_v25 = vmax.f32 %v1224_v19, %v1225_v24 }
 0x37d   : > { %v4230_v26 = vpop.eup %3327  ;;  %v1256_v27 = vmul.f32 1.442695, %v1241_v5 }
 0x37e   : > { %v4232_v29 = vpop.eup %3329  ;;  %v1265_v16 = vsel %vm1177_vm3, %v4230_v26, 0.0  ;;  %v1240_v30 = vsub.f32 %v1175_v39, %v1226_v25 }
 0x37f   : > { %v1266_v31 = vrot.slane %v1265_v16, 4  ;;  %v1258_v20 = vsel %vm1177_vm3, %v4232_v29, 0.0  ;;  %3339 = vpow2.f32 %v1256_v27 }
 0x380   : > { %v1259_v32 = vrot.slane %v1258_v20, 4  ;;  %v1254_v33 = vmul.f32 1.442695, %v1240_v30 }
 0x381   : > { %v4238_v35 = vpop.eup %3331  ;;  %v1267_v34 = vadd.f32 %v1266_v31, %v1265_v16 }
 0x382   : > { %v4240_v36 = vpop.eup %3333  ;;  %v1260_v37 = vadd.f32 %v1259_v32, %v1258_v20  ;;  %v1279_v38 = vsel %vm1177_vm3, %v4238_v35, 0.0  ;;  %3341 = vpow2.f32 %v1254_v33 }
 0x383   : > { %v1268_v40 = vrot.slane %v1267_v34, 2  ;;  %v1280_v41 = vrot.slane %v1279_v38, 4  ;;  %v1272_v39 = vsel %vm1177_vm3, %v4240_v36, 0.0 }
 0x384   : > { %v1273_v42 = vrot.slane %v1272_v39, 4  ;;  %v1261_v43 = vrot.slane %v1260_v37, 2 }
 0x385   : > { %v4246_v44 = vpop.eup %3335  ;;  %v1269_v45 = vadd.f32 %v1268_v40, %v1267_v34  ;;  %v1281_v46 = vadd.f32 %v1280_v41, %v1279_v38 }
 0x386   : > { %v4248_v47 = vpop.eup %3337  ;;  %v1274_v48 = vadd.f32 %v1273_v42, %v1272_v39  ;;  %v1293_v49 = vsel %vm1177_vm3, %v4246_v44, 0.0  ;;  %v1262_v50 = vadd.f32 %v1261_v43, %v1260_v37 }
 0x387   : > { %v1270_v51 = vrot.slane %v1269_v45, 1  ;;  %v1282_v52 = vrot.slane %v1281_v46, 2  ;;  %v1294_v53 = vrot.slane %v1293_v49, 4  ;;  %v1286_v55 = vsel %vm1177_vm3, %v4248_v47, 0.0 }
 0x388   : > { %v1275_v57 = vrot.slane %v1274_v48, 2  ;;  %v1287_v59 = vrot.slane %v1286_v55, 4  ;;  %v1263_v60 = vrot.slane %v1262_v50, 1 }
 0x389   : > { %v4254_v61 = vpop.eup %3339  ;;  %v1283_v62 = vadd.f32 %v1282_v52, %v1281_v46  ;;  %v1295_v63 = vadd.f32 %v1294_v53, %v1293_v49  ;;  %v1271_v2 = vadd.f32 %v1270_v51, %v1269_v45 }
 0x38a   : > { %v1276_v56 = vadd.f32 %v1275_v57, %v1274_v48  ;;  %v1288_v4 = vadd.f32 %v1287_v59, %v1286_v55  ;;  %v1307_v6 = vsel %vm1177_vm3, %v4254_v61, 0.0  ;;  %v1264_v58 = vadd.f32 %v1263_v60, %v1262_v50 }
 0x38b   : > { %v1284_v7 = vrot.slane %v1283_v62, 1  ;;  %v1296_v9 = vrot.slane %v1295_v63, 2  ;;  %v1308_v11 = vrot.slane %v1307_v6, 4  ;;  %3343 = vrcp.f32 %v1271_v2 }
 0x38c   : > { %v3342_v12 = vpop.eup %3341  ;;  %v1277_v13 = vrot.slane %v1276_v56, 1  ;;  %v1289_v14 = vrot.slane %v1288_v4, 2  ;;  %3345 = vrcp.f32 %v1264_v58 }
 0x38d   : > { %v1297_v15 = vadd.f32 %v1296_v9, %v1295_v63  ;;  %v1309_v17 = vadd.f32 %v1308_v11, %v1307_v6  ;;  %v1300_v18 = vsel %vm1177_vm3, %v3342_v12, 0.0  ;;  %v1285_v19 = vadd.f32 %v1284_v7, %v1283_v62 }
 0x38e   : > { %v1290_v21 = vadd.f32 %v1289_v14, %v1288_v4  ;;  %v1301_v1 = vrot.slane %v1300_v18, 4  ;;  %v1278_v23 = vadd.f32 %v1277_v13, %v1276_v56 }
 0x38f   : > { %v1298_v24 = vrot.slane %v1297_v15, 1  ;;  %v1310_v5 = vrot.slane %v1309_v17, 2  ;;  %3347 = vrcp.f32 %v1285_v19 }
 0x390   : > { %v1291_v25 = vrot.slane %v1290_v21, 1  ;;  %v1302_v27 = vadd.f32 %v1301_v1, %v1300_v18  ;;  %3349 = vrcp.f32 %v1278_v23 }
 0x391   : > { %v1311_v16 = vadd.f32 %v1310_v5, %v1309_v17  ;;  %v1299_v30 = vadd.f32 %v1298_v24, %v1297_v15 }
 0x392   : > { %v1303_v31 = vrot.slane %v1302_v27, 2  ;;  %v1292_v20 = vadd.f32 %v1291_v25, %v1290_v21 }
 0x393   : > { %v1312_v32 = vrot.slane %v1311_v16, 1  ;;  %3351 = vrcp.f32 %v1299_v30 }
 0x394   : > { %v1304_v33 = vadd.f32 %v1303_v31, %v1302_v27  ;;  %3353 = vrcp.f32 %v1292_v20 }
 0x395   : > { %v3344_v34 = vpop.eup %3343  ;;  %v1313_v37 = vadd.f32 %v1312_v32, %v1311_v16 }
 0x396   : > { %v3346_v38 = vpop.eup %3345  ;;  %v1305_v40 = vrot.slane %v1304_v33, 1  ;;  %v1323_v39 = vmul.f32 %v3344_v34, %v4230_v26 }
 0x397   : > { %v1322_v41 = vmul.f32 %v3346_v38, %v4232_v29  ;;  %3355 = vrcp.f32 %v1313_v37 }
 0x398   : > { %v1306_v42 = vadd.f32 %v1305_v40, %v1304_v33 }
 0x399   : > { %v3348_v43 = vpop.eup %3347  ;;  %3062 = vmatprep.mubr.msk.f32.mxu0 %vm1177_vm3, %v1322_v41 }
 0x39a   : > { %v3350_v45 = vpop.eup %3349  ;;  %3063 = vmatmul.mubr.msk.f32.vlgmr.msra.gmra.mrb[0].mxu0 %vm1177_vm3, %v1323_v39  ;;  %3357 = vrcp.f32 %v1306_v42  ;;  %v1325_v48 = vmul.f32 %v3348_v43, %v4238_v35  ;;  %v3313_v35 = vld [vmem:[%s4633_s28] sm:$0xff]  }
 0x39b   : > { %v1324_v46 = vmul.f32 %v3350_v45, %v4240_v36  ;;  %3075 = vmatpush3.bf16.msra.mxu1 %v3313_v35 }
 0x39c   : > { %3076 = vmatprep.subr.bf16.mxu1 %v3742_v0 }
 0x39d   : > { %v3352_v49 = vpop.eup %3351  ;;  %3065 = vmatprep.mubr.msk.f32.mxu0 %vm1177_vm3, %v1324_v46 }
 0x39e   : > { %v3354_v50 = vpop.eup %3353  ;;  %3066 = vmatmul.mubr.msk.f32.gmra.mrb[2].mxu0 %vm1177_vm3, %v1325_v48  ;;  %v1327_v29 = vmul.f32 %v3352_v49, %v4246_v44  ;;  %v3314_v44 = vld [vmem:[%s4634_s1 + $0x8] sm:$0xff]  }
 0x39f   : > { %v1326_v26 = vmul.f32 %v3354_v50, %v4248_v47  ;;  %3077 = vmatpush3.bf16.msra.mxu1 %v3314_v44  ;;  %v1464_v47 = vpop.permute.xlu0 %1463 }
 0x3a0   : > { %3090 = vmatprep.subr.bf16.mxu1 %v3742_v0 }
 0x3a1   : > { %3068 = vmatprep.mubr.msk.f32.mxu0 %vm1177_vm3, %v1326_v26  ;;  %v3356_v51 = vpop.eup %3355 }
 0x3a2   : > { %3069 = vmatmul.mubr.msk.f32.gmra.mrb[4].mxu0 %vm1177_vm3, %v1327_v29  ;;  %v1329_v36 = vmul.f32 %v3356_v51, %v4254_v61 }
 0x3a4   : > { %v3358_v52 = vpop.eup %3357 }
 0x3a5   : > { %v1328_v53 = vmul.f32 %v3358_v52, %v3342_v12 }
 0x3a7   : > { %3071 = vmatprep.mubr.msk.f32.mxu0 %vm1177_vm3, %v1328_v53 }
 0x3a8   : > { %3072 = vmatmul.mubr.msk.f32.gmra.mrb[6].mxu0 %vm1177_vm3, %v1329_v36 }
 0x3a9   : > { %3086 = vmatprep.mubr.msk.bf16.mxu0 %vm3743_vm0, %v3742_v0 }
 0x46d   : > { %v3064_v55 = vpop.f32.mrb[0].mxu0 }
 0x46e   : > { %v1467_v57 = vmul.f32 %v3064_v55, %v1464_v47  ;;  %v1424_v59 = vpop.f32.mrb[1].mxu0 }
 0x46f   : > { %v1466_v60 = vmul.f32 %v1464_v47, %v1424_v59 }
 0x470   : > { %v1481_v61 = vsel %vm895_vm1, %v1467_v57, 0.0 }
 0x471   : > { %v1482_v62 = vrot.slane %v1481_v61, 4  ;;  %v1474_v63 = vsel %vm895_vm1, %v1466_v60, 0.0  ;;  %v3067_v2 = vpop.f32.mrb[2].mxu0 }
 0x472   : > { %v1475_v56 = vrot.slane %v1474_v63, 4  ;;  %v1469_v4 = vmul.f32 %v3067_v2, %v1464_v47  ;;  %v1434_v6 = vpop.f32.mrb[3].mxu0 }
 0x473   : > { %v1483_v58 = vadd.f32 %v1482_v62, %v1481_v61  ;;  %v1468_v7 = vmul.f32 %v1464_v47, %v1434_v6 }
 0x474   : > { %v1476_v9 = vadd.f32 %v1475_v56, %v1474_v63  ;;  %v1495_v11 = vsel %vm895_vm1, %v1469_v4, 0.0 }
 0x475   : > { %v1484_v12 = vrot.slane %v1483_v58, 2  ;;  %v1496_v13 = vrot.slane %v1495_v11, 4  ;;  %v1488_v14 = vsel %vm895_vm1, %v1468_v7, 0.0  ;;  %v3070_v15 = vpop.f32.mrb[4].mxu0 }
 0x476   : > { %v1477_v17 = vrot.slane %v1476_v9, 2  ;;  %v1489_v18 = vrot.slane %v1488_v14, 4  ;;  %v1471_v19 = vmul.f32 %v3070_v15, %v1464_v47  ;;  %v1444_v21 = vpop.f32.mrb[5].mxu0 }
 0x477   : > { %v1485_v1 = vadd.f32 %v1484_v12, %v1483_v58  ;;  %v1497_v23 = vadd.f32 %v1496_v13, %v1495_v11  ;;  %v1470_v24 = vmul.f32 %v1464_v47, %v1444_v21 }
 0x478   : > { %v1478_v5 = vadd.f32 %v1477_v17, %v1476_v9  ;;  %v1490_v25 = vadd.f32 %v1489_v18, %v1488_v14  ;;  %v1509_v27 = vsel %vm895_vm1, %v1471_v19, 0.0 }
 0x479   : > { %v1486_v16 = vrot.slane %v1485_v1, 1  ;;  %v1498_v30 = vrot.slane %v1497_v23, 2  ;;  %v1510_v31 = vrot.slane %v1509_v27, 4  ;;  %v1502_v20 = vsel %vm895_vm1, %v1470_v24, 0.0 }
 0x47a   : > { %v1479_v32 = vrot.slane %v1478_v5, 1  ;;  %v1491_v33 = vrot.slane %v1490_v25, 2  ;;  %v1503_v34 = vrot.slane %v1502_v20, 4 }
 0x47b   : > { %v1487_v37 = vadd.f32 %v1486_v16, %v1485_v1  ;;  %v1499_v38 = vadd.f32 %v1498_v30, %v1497_v23  ;;  %v1511_v40 = vadd.f32 %v1510_v31, %v1509_v27  ;;  %v3073_v41 = vpop.f32.mrb[6].mxu0 }
 0x47c   : > { %v1480_v39 = vadd.f32 %v1479_v32, %v1478_v5  ;;  %v1492_v42 = vadd.f32 %v1491_v33, %v1490_v25  ;;  %v1504_v43 = vadd.f32 %v1503_v34, %v1502_v20  ;;  %v1473_v45 = vmul.f32 %v3073_v41, %v1464_v47  ;;  %v1454_v46 = vpop.f32.mrb[7].mxu0  ;;  %v2914_v41 = vld [vmem:[#allocation7] ss:$0 sm:$0xff] }
 0x47d   : > { %v1531_v48 = vpack.c.bf16 %v1487_v37, %v1487_v37  ;;  %v1500_v49 = vrot.slane %v1499_v38, 1  ;;  %v1512_v50 = vrot.slane %v1511_v40, 2  ;;  %v1472_v26 = vmul.f32 %v1464_v47, %v1454_v46 }
 0x47e   : > { %v1530_v29 = vpack.c.bf16 %v1480_v39, %v1480_v39  ;;  %v1493_v51 = vrot.slane %v1492_v42, 1  ;;  %v1505_v52 = vrot.slane %v1504_v43, 2  ;;  %v1523_v53 = vsel %vm895_vm1, %v1473_v45, 0.0 }
 0x47f   : > { %v1558_v36 = vunpack.c.l.b16 %v1531_v48  ;;  %v1501_v35 = vadd.f32 %v1500_v49, %v1499_v38  ;;  %v1513_v44 = vadd.f32 %v1512_v50, %v1511_v40  ;;  %v1524_v55 = vrot.slane %v1523_v53, 4 }
 0x480   : > { %v1557_v57 = vunpack.c.l.b16 %v1530_v29  ;;  %v1494_v59 = vadd.f32 %v1493_v51, %v1492_v42  ;;  %v1506_v60 = vadd.f32 %v1505_v52, %v1504_v43  ;;  %v1516_v61 = vsel %vm895_vm1, %v1472_v26, 0.0 }
 0x481   : > { %v1533_v62 = vpack.c.bf16 %v1501_v35, %v1501_v35  ;;  %v1514_v63 = vrot.slane %v1513_v44, 1  ;;  %v1525_v2 = vadd.f32 %v1524_v55, %v1523_v53  ;;  %v1517_v56 = vrot.slane %v1516_v61, 4  ;;  %v3315_v53 = vld [vmem:[%s4635_s10] sm:$0xff]   ;;  %v3318_v35 = vld [vmem:[%s4548_s12 + $0x8] sm:$0xff]  }
 0x482   : > { %v1566_v47 = vsel %vm1565_vm4, %v1558_v36, %v1557_v57  ;;  %v1532_v4 = vpack.c.bf16 %v1494_v59, %v1494_v59  ;;  %v1507_v6 = vrot.slane %v1506_v60, 1  ;;  %3083 = vmatpush3.bf16.msra.mxu0 %v3315_v53  ;;  %v3317_v36 = vld [vmem:[%s4548_s12] sm:$0xff]  }
 0x483   : > { %v1515_v58 = vadd.f32 %v1514_v63, %v1513_v44  ;;  %v1526_v7 = vrot.slane %v1525_v2, 2  ;;  %v1518_v9 = vadd.f32 %v1517_v56, %v1516_v61  ;;  %v1560_v13 = vunpack.c.l.b16 %v1533_v62  ;;  %3084 = vmatprep.subr.bf16.mxu0 %v3742_v0  ;;  %v865_v44 = vld [vmem:[%s862_s23] sm:$0xff]  ;;  %v2918_v62 = vld [vmem:[#allocation8] ss:$0 sm:$0xff]  ;;  %s852_s23 = sand.u32 1, %s4637_s11   ;;  %s4641_s11 = sld [smem:[#allocation47_spill]] }
 0x484   : > { %v1559_v11 = vunpack.c.l.b16 %v1532_v4  ;;  %v1508_v12 = vadd.f32 %v1507_v6, %v1506_v60  ;;  %v1733_v55 = vpack.c.bf16 %v865_v44, %v865_v44  ;;  %s2890_s2 = sshll.u32 %s852_s23, 3  ;;  %s2696_s8 = scalar_lea.sflag [#allocation4], %s852_s23 }
 0x485   : > { %v1535_v14 = vpack.c.bf16 %v1515_v58, %v1515_v58  ;;  %v1527_v15 = vadd.f32 %v1526_v7, %v1525_v2  ;;  %v1519_v17 = vrot.slane %v1518_v9, 2  ;;  %v2919_v2 = vld [vmem:[#allocation10] ss:$0 sm:$0xff]  ;;  %v2924_v58 = vld [vmem:[#allocation13] ss:$0 sm:$0xff]  ;;  %s854_s4 = scalar_lea.vmem [#allocation17], %s2890_s2 }
 0x486   : > { %v1568_v18 = vsel %vm1567_vm5, %v1559_v11, %v1566_v47  ;;  %v1534_v19 = vpack.c.bf16 %v1508_v12, %v1508_v12  ;;  %v2920_v12 = vld [vmem:[#allocation11] ss:$0 sm:$0xff]  ;;  %s2709_s28 = sshll.u32 %s854_s4, 4  ;;  %s3653_s2 = sshll.u32 %s3747_s6, 4  ;;  %s4495_s28 = int_to_ptr.vmem [resolvable:$true] %s2709_s28  ;;  %s3654_s2 = int_to_ptr.vmem [resolvable:$false] %s3653_s2 }
 0x487   : > { %v1570_v21 = vsel %vm1569_vm6, %v1560_v13, %v1568_v18  ;;  %v1528_v1 = vrot.slane %v1527_v15, 1  ;;  %v1520_v23 = vadd.f32 %v1519_v17, %v1518_v9  ;;  %v1562_v5 = vunpack.c.l.b16 %v1535_v14  ;;  %s3649_s7 = scalar_lea.vmem %s4495_s28, 128  ;;  %p3656_p0 = scmp.lt.s32.totalorder %s4495_s28, %s3654_s2 }
 0x488   : > { %v1561_v24 = vunpack.c.l.b16 %v1534_v19  ;;  %p3650_p8 = scmp.ne.s32.totalorder %s4495_s28, %s3649_s7 }
 0x489   : > { %v1529_v25 = vadd.f32 %v1528_v1, %v1527_v15  ;;  %v1521_v27 = vrot.slane %v1520_v23, 1 }
 0x48a   : > { %v1572_v16 = vsel %vm1571_vm7, %v1561_v24, %v1570_v21  ;;  %p3651_p13 = pnand %p3650_p8, %p4642_p11 }
 0x48b   : > { %v1522_v30 = vadd.f32 %v1521_v27, %v1520_v23  ;;  %v1574_v31 = vsel %vm1573_vm8, %v1562_v5, %v1572_v16  ;;  %v1537_v20 = vpack.c.bf16 %v1529_v25, %v1529_v25 }
 0x48c   : > { %p3652_p1 = pneg %p3651_p13 }
 0x48d   : > { %v1536_v32 = vpack.c.bf16 %v1522_v30, %v1522_v30  ;;  %v1564_v34 = vunpack.c.l.b16 %v1537_v20 }
 0x48f   : > { %v1563_v33 = vunpack.c.l.b16 %v1536_v32 }
 0x491   : > { %v1576_v37 = vsel %vm1575_vm9, %v1563_v33, %v1574_v31 }
 0x492   : > { %v1578_v38 = vsel %vm1577_vm10, %v1564_v34, %v1576_v37 }
 0x493   : > { %v1579_v40 = vpack.c.b16 %v1578_v38, %v1578_v38 }
 0x495   : > { %3079 = vmatmul.mubr.msk.bf16.vlgmr.msra.gmra.mrb[12].mxu1 %vm895_vm1, %v1579_v40 }
 0x496   : > { %3094 = vmatprep.mubr.msk.bf16.mxu1 %vm3743_vm0, %v3742_v0  ;;  %3091 = vmatpush3.bf16.msra.mxu1 %v3317_v36 }
 0x497   : > { %3092 = vmatprep.subr.bf16.mxu1 %v3742_v0 }
 0x49a   : > { %3093 = vmatpush3.bf16.msra.mxu1 %v3318_v35 }
 0x49b   : > { %3118 = vmatprep.subr.msk.mxu1 %vm1354_vm2, %v4215_v54 }
 0x49d   : > { %3095 = vmatmul.mubr.msk.bf16.vlgmr.msra.gmra.mrb[16].mxu1 %vm895_vm1, %v1733_v55 }
 0x49e   : > { %3119 = vmatpush3.msk.msra.mxu1 %vm1354_vm2, %v4215_v54 }
 0x49f   : > { %3140 = vmatprep.subr.bf16.mxu1 %v3742_v0 }
 0x568   : > { %v1629_v39 = vpop.f32.mrb[12].mxu1 }
 0x569   : > { %v1630_v42 = vadd.f32 %v2914_v41, %v1629_v39  ;;  %v3080_v43 = vpop.f32.mrb[13].mxu1 }
 0x56a   : > { %v1632_v45 = vpop.f32.mrb[14].mxu1 }
 0x56b   : > { %v3081_v46 = vpop.f32.mrb[15].mxu1  ;;  %v1635_v48 = vadd.f32 %v1630_v42, %v4159_v3  ;;  %v3316_v3 = vld [vmem:[%s4635_s10 + $0x8] sm:$0xff]   ;;  %s4493_s10 = scalar_lea.hbm %s4641_s11, %s2964_s5 }
 0x56c   : > { %3085 = vmatpush3.bf16.msra.mxu0 %v3316_v3 }
 0x56d   : > { %v1638_v49 = vsel %vm895_vm1, %v1635_v48, 0.0  ;;  %3169 = vmatprep.subr.bf16.mxu0 %v4174_v8 }
 0x56e   : > { %1639 = vadd.xlane.f32.xlu1 %v1638_v49 }
 0x570   : > { %v1794_v54 = vpop.f32.mrb[16].mxu1 }
 0x571   : > { %v3096_v6 = vpop.f32.mrb[17].mxu1  ;;  %v1795_v9 = vadd.f32 %v2924_v58, %v1794_v54 }
 0x572   : > { %v1797_v7 = vpop.f32.mrb[18].mxu1 }
 0x573   : > { %v3097_v11 = vpop.f32.mrb[19].mxu1  ;;  %2317 = vrot.lane.b32.xlu0 %v1795_v9, %s3744_s27  ;;  %s4639_s27 = sld [smem:[#allocation45_spill]] }
 0x5fb   : > { %v1640_v50 = vpop.xlane.xlu1 %1639 }
 0x5fc   : > { %v1642_v26 = vmul.f32 0.03125, %v1640_v50 }
 0x5fe   : > { %v1643_v29 = vsub.f32 %v1635_v48, %v1642_v26 }
 0x600   : > { %v1644_v51 = vmul.f32 %v1643_v29, %v1643_v29 }
 0x602   : > { %v1645_v52 = vsel %vm895_vm1, %v1644_v51, 0.0 }
 0x603   : > { %1646 = vadd.xlane.f32.xlu1 %v1645_v52 }
 0x690   : > { %v1647_v57 = vpop.xlane.xlu1 %1646 }
 0x691   : > { %v1648_v59 = vmul.f32 0.03125, %v1647_v57 }
 0x693   : > { %v1649_v60 = vadd.f32 1e-05, %v1648_v59 }
 0x695   : > { %3359 = vrsqrt.f32 %v1649_v60 }
 0x69f   : > { %v3360_v61 = vpop.eup %3359 }
 0x6a0   : > { %v1651_v63 = vmul.f32 %v3360_v61, %v1643_v29 }
 0x6a2   : > { %v1658_v56 = vmul.f32 %v2918_v62, %v1651_v63 }
 0x6a4   : > { %v4331_v47 = vadd.f32 %v2919_v2, %v1658_v56 }
 0x6a6   : > { %v1666_v4 = vpack.c.bf16 %v4331_v47, %v4331_v47 }
 0x6a8   : > { %3087 = vmatmul.mubr.msk.bf16.vlgmr.msra.gmra.mrb[8].mxu0 %vm895_vm1, %v1666_v4 }
 0x6a9   : > { %3171 = vmatpush3.bf16.msra.mxu0 %v4174_v8 }
 0x6aa   : > { %3173 = vmatprep.subr.bf16.mxu0 %v4179_v10 }
 0x6ad   : > { %3175 = vmatpush3.bf16.msra.mxu0 %v4179_v10 }
 0x6ae   : > { %3132 = vmatprep.subr.bf16.mxu0 %v3742_v0 }
 0x77b   : > { %v1727_v13 = vpop.f32.mrb[8].mxu0 }
 0x77c   : > { %v1728_v14 = vadd.f32 %v2920_v12, %v1727_v13  ;;  %v3088_v15 = vpop.f32.mrb[9].mxu0 }
 0x77d   : > { %v1730_v17 = vpop.f32.mrb[10].mxu0 }
 0x77e   : > { %v1801_v8 = vcombine.high %v1728_v14, %v1728_v14  ;;  %v1808_v18 = vrot.slane %v1728_v14, %v4187_v22  ;;  %v3089_v19 = vpop.f32.mrb[11].mxu0 }
 0x780   : > { %v1815_v10 = vrot.slane %v1801_v8, %v4187_v22  ;;  %v1816_v21 = vcombine.high %v1808_v18, %v1808_v18  ;;  %v1824_v1 = vrot.slane %v1808_v18, %v4187_v22 }
 0x782   : > { %v1817_v23 = vcombine.high %v1815_v10, %v1815_v10  ;;  %v1838_v24 = vrot.slane %v1816_v21, %v4187_v22  ;;  %v1846_v5 = vcombine.high %v1824_v1, %v1824_v1  ;;  %v1831_v25 = vrot.slane %v1815_v10, %v4187_v22 }
 0x783   : > { %v1853_v27 = vrot.slane %v1824_v1, %v4192_v28 }
 0x784   : > { %v1848_v16 = vcombine.high %v1838_v24, %v1838_v24  ;;  %v1857_v30 = vrot.slane %v1838_v24, %v4192_v28  ;;  %v1861_v31 = vrot.slane %v1846_v5, %v4192_v28  ;;  %v1845_v32 = vrot.slane %v1817_v23, %v4187_v22 }
 0x785   : > { %v1890_v20 = vmul.f32 %v1853_v27, %v1795_v9  ;;  %v1847_v37 = vcombine.high %v1831_v25, %v1831_v25  ;;  %v1869_v38 = vrot.slane %v1831_v25, %v4192_v28 }
 0x786   : > { %v1891_v33 = vmul.f32 %v1857_v30, %v1795_v9  ;;  %v1865_v34 = vrot.slane %v1848_v16, %v4192_v28  ;;  %v1892_v40 = vmul.f32 %v1861_v31, %v1795_v9  ;;  %v1849_v41 = vcombine.high %v1845_v32, %v1845_v32 }
 0x787   : > { %3106 = vmatprep.mubr.msk.f32.mxu0 %vm895_vm1, %v1890_v20  ;;  %v1873_v42 = vrot.slane %v1845_v32, %v4192_v28  ;;  %v1894_v43 = vmul.f32 %v1869_v38, %v1795_v9  ;;  %v1877_v22 = vrot.slane %v1847_v37, %v4192_v28 }
 0x788   : > { %3107 = vmatmul.mubr.msk.f32.vlgmr.msra.gmra.mrb[12].mxu0 %vm895_vm1, %v1891_v33  ;;  %v1893_v39 = vmul.f32 %v1865_v34, %v1795_v9  ;;  %v1881_v46 = vrot.slane %v1849_v41, %v4192_v28 }
 0x789   : > { %3109 = vmatprep.mubr.msk.f32.mxu0 %vm895_vm1, %v1892_v40  ;;  %v1895_v45 = vmul.f32 %v1873_v42, %v1795_v9  ;;  %v1896_v48 = vmul.f32 %v1877_v22, %v1795_v9 }
 0x78a   : > { %v1897_v49 = vmul.f32 %v1881_v46, %v1795_v9 }
 0x78c   : > { %3110 = vmatmul.mubr.msk.f32.gmra.mrb[14].mxu0 %vm895_vm1, %v1893_v39 }
 0x78d   : > { %3112 = vmatprep.mubr.msk.f32.mxu0 %vm895_vm1, %v1894_v43 }
 0x790   : > { %3113 = vmatmul.mubr.msk.f32.gmra.mrb[16].mxu0 %vm895_vm1, %v1895_v45 }
 0x791   : > { %3115 = vmatprep.mubr.msk.f32.mxu0 %vm895_vm1, %v1896_v48 }
 0x794   : > { %3116 = vmatmul.mubr.msk.f32.gmra.mrb[18].mxu0 %vm895_vm1, %v1897_v49 }
 0x795   : > { %3136 = vmatprep.mubr.msk.bf16.mxu0 %vm3743_vm0, %v3742_v0 }
 0x85b   : > { %v3108_v50 = vpop.f32.mrb[12].mxu0 }
 0x85c   : > { %v2028_v26 = vmul.f32 0.35355338, %v3108_v50  ;;  %v1988_v29 = vpop.f32.mrb[13].mxu0 }
 0x85d   : > { %v2027_v51 = vmul.f32 0.35355338, %v1988_v29 }
 0x85e   : > { %v2042_v52 = vsel %vm1177_vm3, %v2028_v26, -inf }
 0x85f   : > { %v2043_v53 = vrot.slane %v2042_v52, 4  ;;  %v2035_v28 = vsel %vm1177_vm3, %v2027_v51, -inf  ;;  %v3111_v3 = vpop.f32.mrb[14].mxu0 }
 0x860   : > { %v2036_v36 = vrot.slane %v2035_v28, 4  ;;  %v2030_v35 = vmul.f32 0.35355338, %v3111_v3  ;;  %v1998_v44 = vpop.f32.mrb[15].mxu0 }
 0x861   : > { %v2044_v55 = vmax.f32 %v2042_v52, %v2043_v53  ;;  %v2029_v57 = vmul.f32 0.35355338, %v1998_v44 }
 0x862   : > { %v2037_v59 = vmax.f32 %v2035_v28, %v2036_v36  ;;  %v2056_v60 = vsel %vm1177_vm3, %v2030_v35, -inf }
 0x863   : > { %v2045_v61 = vrot.slane %v2044_v55, 2  ;;  %v2057_v62 = vrot.slane %v2056_v60, 4  ;;  %v2049_v63 = vsel %vm1177_vm3, %v2029_v57, -inf  ;;  %v3114_v2 = vpop.f32.mrb[16].mxu0 }
 0x864   : > { %v2038_v56 = vrot.slane %v2037_v59, 2  ;;  %v2050_v4 = vrot.slane %v2049_v63, 4  ;;  %v2032_v54 = vmul.f32 0.35355338, %v3114_v2  ;;  %v2008_v6 = vpop.f32.mrb[17].mxu0 }
 0x865   : > { %v2046_v58 = vmax.f32 %v2044_v55, %v2045_v61  ;;  %v2058_v7 = vmax.f32 %v2056_v60, %v2057_v62  ;;  %v2031_v9 = vmul.f32 0.35355338, %v2008_v6 }
 0x866   : > { %v2039_v11 = vmax.f32 %v2037_v59, %v2038_v56  ;;  %v2051_v12 = vmax.f32 %v2049_v63, %v2050_v4  ;;  %v2070_v13 = vsel %vm1177_vm3, %v2032_v54, -inf }
 0x867   : > { %v2047_v14 = vrot.slane %v2046_v58, 1  ;;  %v2059_v15 = vrot.slane %v2058_v7, 2  ;;  %v2071_v17 = vrot.slane %v2070_v13, 4  ;;  %v2063_v8 = vsel %vm1177_vm3, %v2031_v9, -inf  ;;  %v3117_v18 = vpop.f32.mrb[18].mxu0 }
 0x868   : > { %v2040_v19 = vrot.slane %v2039_v11, 1  ;;  %v2052_v10 = vrot.slane %v2051_v12, 2  ;;  %v2064_v21 = vrot.slane %v2063_v8, 4  ;;  %v2034_v1 = vmul.f32 0.35355338, %v3117_v18  ;;  %v2018_v23 = vpop.f32.mrb[19].mxu0 }
 0x869   : > { %v2048_v24 = vmax.f32 %v2046_v58, %v2047_v14  ;;  %v2060_v5 = vmax.f32 %v2058_v7, %v2059_v15  ;;  %v2072_v25 = vmax.f32 %v2070_v13, %v2071_v17  ;;  %v2033_v27 = vmul.f32 0.35355338, %v2018_v23 }
 0x86a   : > { %v2041_v16 = vmax.f32 %v2039_v11, %v2040_v19  ;;  %v2053_v30 = vmax.f32 %v2051_v12, %v2052_v10  ;;  %v2065_v31 = vmax.f32 %v2063_v8, %v2064_v21  ;;  %v2084_v20 = vsel %vm1177_vm3, %v2034_v1, -inf }
 0x86b   : > { %v2092_v32 = vsub.f32 %v2028_v26, %v2048_v24  ;;  %v2061_v33 = vrot.slane %v2060_v5, 1  ;;  %v2073_v34 = vrot.slane %v2072_v25, 2  ;;  %v2085_v37 = vrot.slane %v2084_v20, 4 }
 0x86c   : > { %v2091_v38 = vsub.f32 %v2027_v51, %v2041_v16  ;;  %v2054_v40 = vrot.slane %v2053_v30, 1  ;;  %v2066_v41 = vrot.slane %v2065_v31, 2  ;;  %v2077_v39 = vsel %vm1177_vm3, %v2033_v27, -inf }
 0x86d   : > { %v2101_v42 = vmul.f32 1.442695, %v2092_v32  ;;  %v2062_v43 = vmax.f32 %v2060_v5, %v2061_v33  ;;  %v2074_v22 = vmax.f32 %v2072_v25, %v2073_v34  ;;  %v2086_v45 = vmax.f32 %v2084_v20, %v2085_v37 }
 0x86e   : > { %v2099_v46 = vmul.f32 1.442695, %v2091_v38  ;;  %v2055_v48 = vmax.f32 %v2053_v30, %v2054_v40  ;;  %v2067_v49 = vmax.f32 %v2065_v31, %v2066_v41  ;;  %v2078_v50 = vrot.slane %v2077_v39, 4 }
 0x86f   : > { %3361 = vpow2.f32 %v2101_v42  ;;  %v2094_v29 = vsub.f32 %v2030_v35, %v2062_v43  ;;  %v2075_v52 = vrot.slane %v2074_v22, 1  ;;  %v2087_v26 = vrot.slane %v2086_v45, 2 }
 0x870   : > { %3363 = vpow2.f32 %v2099_v46  ;;  %v2093_v53 = vsub.f32 %v2029_v57, %v2055_v48  ;;  %v2068_v28 = vrot.slane %v2067_v49, 1  ;;  %v2079_v51 = vmax.f32 %v2077_v39, %v2078_v50 }
 0x871   : > { %v2105_v3 = vmul.f32 1.442695, %v2094_v29  ;;  %v2076_v36 = vmax.f32 %v2074_v22, %v2075_v52  ;;  %v2088_v44 = vmax.f32 %v2086_v45, %v2087_v26 }
 0x872   : > { %v2103_v55 = vmul.f32 1.442695, %v2093_v53  ;;  %v2069_v59 = vmax.f32 %v2067_v49, %v2068_v28  ;;  %v2080_v60 = vrot.slane %v2079_v51, 2 }
 0x873   : > { %3365 = vpow2.f32 %v2105_v3  ;;  %v2096_v61 = vsub.f32 %v2032_v54, %v2076_v36  ;;  %v2089_v62 = vrot.slane %v2088_v44, 1 }
 0x874   : > { %3367 = vpow2.f32 %v2103_v55  ;;  %v2095_v63 = vsub.f32 %v2031_v9, %v2069_v59  ;;  %v2081_v2 = vmax.f32 %v2079_v51, %v2080_v60 }
 0x875   : > { %v2109_v56 = vmul.f32 1.442695, %v2096_v61  ;;  %v2090_v35 = vmax.f32 %v2088_v44, %v2089_v62 }
 0x876   : > { %v2107_v4 = vmul.f32 1.442695, %v2095_v63  ;;  %v2082_v6 = vrot.slane %v2081_v2, 1 }
 0x877   : > { %3369 = vpow2.f32 %v2109_v56  ;;  %v2098_v57 = vsub.f32 %v2034_v1, %v2090_v35 }
 0x878   : > { %3371 = vpow2.f32 %v2107_v4  ;;  %v2083_v58 = vmax.f32 %v2081_v2, %v2082_v6 }
 0x879   : > { %v4373_v7 = vpop.eup %3361  ;;  %v2113_v11 = vmul.f32 1.442695, %v2098_v57 }
 0x87a   : > { %v4375_v12 = vpop.eup %3363  ;;  %v2122_v54 = vsel %vm1177_vm3, %v4373_v7, 0.0  ;;  %v2097_v13 = vsub.f32 %v2033_v27, %v2083_v58 }
 0x87b   : > { %v2123_v14 = vrot.slane %v2122_v54, 4  ;;  %v2115_v9 = vsel %vm1177_vm3, %v4375_v12, 0.0  ;;  %3373 = vpow2.f32 %v2113_v11 }
 0x87c   : > { %v2116_v15 = vrot.slane %v2115_v9, 4  ;;  %v2111_v17 = vmul.f32 1.442695, %v2097_v13 }
 0x87d   : > { %v4381_v8 = vpop.eup %3365  ;;  %v2124_v18 = vadd.f32 %v2123_v14, %v2122_v54 }
 0x87e   : > { %v4383_v19 = vpop.eup %3367  ;;  %v2117_v10 = vadd.f32 %v2116_v15, %v2115_v9  ;;  %v2136_v21 = vsel %vm1177_vm3, %v4381_v8, 0.0  ;;  %3375 = vpow2.f32 %v2111_v17 }
 0x87f   : > { %v2125_v1 = vrot.slane %v2124_v18, 2  ;;  %v2137_v23 = vrot.slane %v2136_v21, 4  ;;  %v2129_v24 = vsel %vm1177_vm3, %v4383_v19, 0.0 }
 0x880   : > { %v2118_v5 = vrot.slane %v2117_v10, 2  ;;  %v2130_v25 = vrot.slane %v2129_v24, 4 }
 0x881   : > { %v4389_v27 = vpop.eup %3369  ;;  %v2126_v16 = vadd.f32 %v2125_v1, %v2124_v18  ;;  %v2138_v30 = vadd.f32 %v2137_v23, %v2136_v21 }
 0x882   : > { %v4391_v31 = vpop.eup %3371  ;;  %v2119_v20 = vadd.f32 %v2118_v5, %v2117_v10  ;;  %v2131_v32 = vadd.f32 %v2130_v25, %v2129_v24  ;;  %v2150_v33 = vsel %vm1177_vm3, %v4389_v27, 0.0 }
 0x883   : > { %v2127_v34 = vrot.slane %v2126_v16, 1  ;;  %v2139_v37 = vrot.slane %v2138_v30, 2  ;;  %v2151_v38 = vrot.slane %v2150_v33, 4  ;;  %v2143_v40 = vsel %vm1177_vm3, %v4391_v31, 0.0 }
 0x884   : > { %v2120_v41 = vrot.slane %v2119_v20, 1  ;;  %v2132_v39 = vrot.slane %v2131_v32, 2  ;;  %v2144_v42 = vrot.slane %v2143_v40, 4 }
 0x885   : > { %v4397_v43 = vpop.eup %3373  ;;  %v2128_v22 = vadd.f32 %v2127_v34, %v2126_v16  ;;  %v2140_v45 = vadd.f32 %v2139_v37, %v2138_v30  ;;  %v2152_v46 = vadd.f32 %v2151_v38, %v2150_v33 }
 0x886   : > { %v2133_v48 = vadd.f32 %v2132_v39, %v2131_v32  ;;  %v2145_v49 = vadd.f32 %v2144_v42, %v2143_v40  ;;  %v2164_v50 = vsel %vm1177_vm3, %v4397_v43, 0.0  ;;  %v2121_v29 = vadd.f32 %v2120_v41, %v2119_v20 }
 0x887   : > { %3377 = vrcp.f32 %v2128_v22  ;;  %v2141_v52 = vrot.slane %v2140_v45, 1  ;;  %v2153_v26 = vrot.slane %v2152_v46, 2  ;;  %v2165_v53 = vrot.slane %v2164_v50, 4 }
 0x888   : > { %v3376_v28 = vpop.eup %3375  ;;  %v2134_v51 = vrot.slane %v2133_v48, 1  ;;  %v2146_v3 = vrot.slane %v2145_v49, 2  ;;  %3379 = vrcp.f32 %v2121_v29 }
 0x889   : > { %v2154_v36 = vadd.f32 %v2153_v26, %v2152_v46  ;;  %v2166_v44 = vadd.f32 %v2165_v53, %v2164_v50  ;;  %v2157_v55 = vsel %vm1177_vm3, %v3376_v28, 0.0  ;;  %v2142_v59 = vadd.f32 %v2141_v52, %v2140_v45 }
 0x88a   : > { %v2147_v60 = vadd.f32 %v2146_v3, %v2145_v49  ;;  %v2158_v61 = vrot.slane %v2157_v55, 4  ;;  %v2135_v62 = vadd.f32 %v2134_v51, %v2133_v48 }
 0x88b   : > { %v2155_v63 = vrot.slane %v2154_v36, 1  ;;  %v2167_v2 = vrot.slane %v2166_v44, 2  ;;  %3381 = vrcp.f32 %v2142_v59 }
 0x88c   : > { %v2148_v56 = vrot.slane %v2147_v60, 1  ;;  %v2159_v35 = vadd.f32 %v2158_v61, %v2157_v55  ;;  %3383 = vrcp.f32 %v2135_v62 }
 0x88d   : > { %v2168_v4 = vadd.f32 %v2167_v2, %v2166_v44  ;;  %v2156_v6 = vadd.f32 %v2155_v63, %v2154_v36 }
 0x88e   : > { %v2160_v57 = vrot.slane %v2159_v35, 2  ;;  %v2149_v58 = vadd.f32 %v2148_v56, %v2147_v60 }
 0x88f   : > { %v2169_v11 = vrot.slane %v2168_v4, 1  ;;  %3385 = vrcp.f32 %v2156_v6 }
 0x890   : > { %v2161_v54 = vadd.f32 %v2160_v57, %v2159_v35  ;;  %3387 = vrcp.f32 %v2149_v58 }
 0x891   : > { %v3378_v13 = vpop.eup %3377  ;;  %v2170_v14 = vadd.f32 %v2169_v11, %v2168_v4 }
 0x892   : > { %v3380_v9 = vpop.eup %3379  ;;  %v2162_v15 = vrot.slane %v2161_v54, 1  ;;  %v2180_v18 = vmul.f32 %v3378_v13, %v4373_v7 }
 0x893   : > { %v2179_v17 = vmul.f32 %v3380_v9, %v4375_v12  ;;  %3389 = vrcp.f32 %v2170_v14 }
 0x894   : > { %v2163_v10 = vadd.f32 %v2162_v15, %v2161_v54 }
 0x895   : > { %v3382_v21 = vpop.eup %3381  ;;  %3120 = vmatprep.mubr.msk.f32.mxu1 %vm1177_vm3, %v2179_v17 }
 0x896   : > { %v3384_v1 = vpop.eup %3383  ;;  %3121 = vmatmul.mubr.msk.f32.vlgmr.msra.gmra.mrb[20].mxu1 %vm1177_vm3, %v2180_v18  ;;  %3391 = vrcp.f32 %v2163_v10  ;;  %v2182_v24 = vmul.f32 %v3382_v21, %v4381_v8  ;;  %v3319_v8 = vld [vmem:[%s4550_s14] sm:$0xff]  }
 0x897   : > { %v2181_v23 = vmul.f32 %v3384_v1, %v4383_v19  ;;  %3133 = vmatpush3.bf16.msra.mxu0 %v3319_v8 }
 0x898   : > { %3134 = vmatprep.subr.bf16.mxu0 %v3742_v0 }
 0x899   : > { %v3386_v5 = vpop.eup %3385  ;;  %3123 = vmatprep.mubr.msk.f32.mxu1 %vm1177_vm3, %v2181_v23 }
 0x89a   : > { %v3388_v25 = vpop.eup %3387  ;;  %3124 = vmatmul.mubr.msk.f32.gmra.mrb[22].mxu1 %vm1177_vm3, %v2182_v24  ;;  %v2184_v12 = vmul.f32 %v3386_v5, %v4389_v27  ;;  %v3320_v27 = vld [vmem:[%s4550_s14 + $0x8] sm:$0xff]  }
 0x89b   : > { %v2183_v7 = vmul.f32 %v3388_v25, %v4391_v31  ;;  %3135 = vmatpush3.bf16.msra.mxu0 %v3320_v27  ;;  %v2318_v31 = vpop.permute.xlu0 %2317 }
 0x89c   : > { %3148 = vmatprep.subr.bf16.mxu0 %v3742_v0 }
 0x89d   : > { %3126 = vmatprep.mubr.msk.f32.mxu1 %vm1177_vm3, %v2183_v7  ;;  %v3390_v16 = vpop.eup %3389 }
 0x89e   : > { %3127 = vmatmul.mubr.msk.f32.gmra.mrb[24].mxu1 %vm1177_vm3, %v2184_v12  ;;  %v2186_v19 = vmul.f32 %v3390_v16, %v4397_v43 }
 0x8a0   : > { %v3392_v30 = vpop.eup %3391 }
 0x8a1   : > { %v2185_v20 = vmul.f32 %v3392_v30, %v3376_v28 }
 0x8a3   : > { %3129 = vmatprep.mubr.msk.f32.mxu1 %vm1177_vm3, %v2185_v20 }
 0x8a4   : > { %3130 = vmatmul.mubr.msk.f32.gmra.mrb[26].mxu1 %vm1177_vm3, %v2186_v19 }
 0x8a5   : > { %3144 = vmatprep.mubr.msk.bf16.mxu1 %vm3743_vm0, %v3742_v0 }
 0x969   : > { %v3122_v32 = vpop.f32.mrb[20].mxu1 }
 0x96a   : > { %v2321_v33 = vmul.f32 %v3122_v32, %v2318_v31  ;;  %v2277_v34 = vpop.f32.mrb[21].mxu1 }
 0x96b   : > { %v2320_v37 = vmul.f32 %v2318_v31, %v2277_v34 }
 0x96c   : > { %v2335_v38 = vsel %vm895_vm1, %v2321_v33, 0.0 }
 0x96d   : > { %v2336_v40 = vrot.slane %v2335_v38, 4  ;;  %v2328_v41 = vsel %vm895_vm1, %v2320_v37, 0.0  ;;  %v3125_v39 = vpop.f32.mrb[22].mxu1 }
 0x96e   : > { %v2329_v42 = vrot.slane %v2328_v41, 4  ;;  %v2323_v43 = vmul.f32 %v3125_v39, %v2318_v31  ;;  %v2287_v22 = vpop.f32.mrb[23].mxu1 }
 0x96f   : > { %v2337_v45 = vadd.f32 %v2336_v40, %v2335_v38  ;;  %v2322_v46 = vmul.f32 %v2318_v31, %v2287_v22 }
 0x970   : > { %v2330_v48 = vadd.f32 %v2329_v42, %v2328_v41  ;;  %v2349_v49 = vsel %vm895_vm1, %v2323_v43, 0.0 }
 0x971   : > { %v2338_v50 = vrot.slane %v2337_v45, 2  ;;  %v2350_v29 = vrot.slane %v2349_v49, 4  ;;  %v2342_v52 = vsel %vm895_vm1, %v2322_v46, 0.0  ;;  %v3128_v26 = vpop.f32.mrb[24].mxu1 }
 0x972   : > { %v2331_v53 = vrot.slane %v2330_v48, 2  ;;  %v2343_v28 = vrot.slane %v2342_v52, 4  ;;  %v2325_v51 = vmul.f32 %v3128_v26, %v2318_v31  ;;  %v2297_v3 = vpop.f32.mrb[25].mxu1 }
 0x973   : > { %v2339_v36 = vadd.f32 %v2338_v50, %v2337_v45  ;;  %v2351_v44 = vadd.f32 %v2350_v29, %v2349_v49  ;;  %v2324_v55 = vmul.f32 %v2318_v31, %v2297_v3 }
 0x974   : > { %v2332_v59 = vadd.f32 %v2331_v53, %v2330_v48  ;;  %v2344_v60 = vadd.f32 %v2343_v28, %v2342_v52  ;;  %v2363_v61 = vsel %vm895_vm1, %v2325_v51, 0.0 }
 0x975   : > { %v2340_v62 = vrot.slane %v2339_v36, 1  ;;  %v2352_v63 = vrot.slane %v2351_v44, 2  ;;  %v2364_v2 = vrot.slane %v2363_v61, 4  ;;  %v2356_v56 = vsel %vm895_vm1, %v2324_v55, 0.0 }
 0x976   : > { %v2333_v35 = vrot.slane %v2332_v59, 1  ;;  %v2345_v4 = vrot.slane %v2344_v60, 2  ;;  %v2357_v6 = vrot.slane %v2356_v56, 4 }
 0x977   : > { %v2341_v57 = vadd.f32 %v2340_v62, %v2339_v36  ;;  %v2353_v58 = vadd.f32 %v2352_v63, %v2351_v44  ;;  %v2365_v11 = vadd.f32 %v2364_v2, %v2363_v61  ;;  %v3131_v54 = vpop.f32.mrb[26].mxu1 }
 0x978   : > { %v2334_v13 = vadd.f32 %v2333_v35, %v2332_v59  ;;  %v2346_v14 = vadd.f32 %v2345_v4, %v2344_v60  ;;  %v2358_v9 = vadd.f32 %v2357_v6, %v2356_v56  ;;  %v2327_v15 = vmul.f32 %v3131_v54, %v2318_v31  ;;  %v2307_v17 = vpop.f32.mrb[27].mxu1  ;;  %v2945_v4 = vld [vmem:[#allocation14] ss:$0 sm:$0xff] }
 0x979   : > { %v2385_v18 = vpack.c.bf16 %v2341_v57, %v2341_v57  ;;  %v2354_v10 = vrot.slane %v2353_v58, 1  ;;  %v2366_v21 = vrot.slane %v2365_v11, 2  ;;  %v2326_v1 = vmul.f32 %v2318_v31, %v2307_v17 }
 0x97a   : > { %v2384_v23 = vpack.c.bf16 %v2334_v13, %v2334_v13  ;;  %v2347_v24 = vrot.slane %v2346_v14, 1  ;;  %v2359_v5 = vrot.slane %v2358_v9, 2  ;;  %v2377_v25 = vsel %vm895_vm1, %v2327_v15, 0.0 }
 0x97b   : > { %v2412_v7 = vunpack.c.l.b16 %v2385_v18  ;;  %v2355_v12 = vadd.f32 %v2354_v10, %v2353_v58  ;;  %v2367_v16 = vadd.f32 %v2366_v21, %v2365_v11  ;;  %v2378_v30 = vrot.slane %v2377_v25, 4  ;;  %v3321_v21 = vld [vmem:[%s4554_s18] sm:$0xff]  }
 0x97c   : > { %v2411_v20 = vunpack.c.l.b16 %v2384_v23  ;;  %v2348_v19 = vadd.f32 %v2347_v24, %v2346_v14  ;;  %v2360_v8 = vadd.f32 %v2359_v5, %v2358_v9  ;;  %v2370_v27 = vsel %vm895_vm1, %v2326_v1, 0.0  ;;  %3141 = vmatpush3.bf16.msra.mxu1 %v3321_v21  ;;  %v3323_v1 = vld [vmem:[%s4556_s20] sm:$0xff]   ;;  %v3324_v23 = vld [vmem:[%s4556_s20 + $0x8] sm:$0xff]  }
 0x97d   : > { %v2387_v32 = vpack.c.bf16 %v2355_v12, %v2355_v12  ;;  %v2368_v33 = vrot.slane %v2367_v16, 1  ;;  %v2379_v34 = vadd.f32 %v2378_v30, %v2377_v25  ;;  %v2371_v37 = vrot.slane %v2370_v27, 4  ;;  %3142 = vmatprep.subr.bf16.mxu1 %v3742_v0  ;;  %v2949_v12 = vld [vmem:[#allocation16] ss:$0 sm:$0xff]  ;;  %v2950_v30 = vld [vmem:[%s4553_s17] ss:$0 sm:$0xff] }
 0x97e   : > { %v2419_v31 = vsel %vm1565_vm4, %v2412_v7, %v2411_v20  ;;  %v2386_v38 = vpack.c.bf16 %v2348_v19, %v2348_v19  ;;  %v2361_v40 = vrot.slane %v2360_v8, 1 }
 0x97f   : > { %v2369_v41 = vadd.f32 %v2368_v33, %v2367_v16  ;;  %v2380_v39 = vrot.slane %v2379_v34, 2  ;;  %v2372_v42 = vadd.f32 %v2371_v37, %v2370_v27  ;;  %v2414_v45 = vunpack.c.l.b16 %v2387_v32  ;;  %v3325_v27 = vld [vmem:[%s4556_s20 + $0x10] sm:$0xff]   ;;  %v3326_v32 = vld [vmem:[%s4556_s20 + $0x18] sm:$0xff]   ;;  %v2951_v33 = vld [vmem:[%s4555_s19] ss:$0 sm:$0xff] }
 0x980   : > { %v2413_v43 = vunpack.c.l.b16 %v2386_v38  ;;  %v2362_v22 = vadd.f32 %v2361_v40, %v2360_v8 }
 0x981   : > { %v2389_v46 = vpack.c.bf16 %v2369_v41, %v2369_v41  ;;  %v2381_v48 = vadd.f32 %v2380_v39, %v2379_v34  ;;  %v2373_v49 = vrot.slane %v2372_v42, 2 }
 0x982   : > { %v2420_v50 = vsel %vm1567_vm5, %v2413_v43, %v2419_v31  ;;  %v2388_v29 = vpack.c.bf16 %v2362_v22, %v2362_v22 }
 0x983   : > { %v2421_v52 = vsel %vm1569_vm6, %v2414_v45, %v2420_v50  ;;  %v2382_v26 = vrot.slane %v2381_v48, 1  ;;  %v2374_v53 = vadd.f32 %v2373_v49, %v2372_v42  ;;  %v2416_v51 = vunpack.c.l.b16 %v2389_v46 }
 0x984   : > { %v2415_v28 = vunpack.c.l.b16 %v2388_v29 }
 0x985   : > { %v2383_v3 = vadd.f32 %v2382_v26, %v2381_v48  ;;  %v2375_v36 = vrot.slane %v2374_v53, 1 }
 0x986   : > { %v2422_v44 = vsel %vm1571_vm7, %v2415_v28, %v2421_v52 }
 0x987   : > { %v2376_v55 = vadd.f32 %v2375_v36, %v2374_v53  ;;  %v2423_v59 = vsel %vm1573_vm8, %v2416_v51, %v2422_v44  ;;  %v2391_v60 = vpack.c.bf16 %v2383_v3, %v2383_v3  ;;  %v2961_v44 = vld [vmem:[%s4639_s27] ss:$0 sm:$0xff]  ;;  %s3655_s27 = scalar_lea.vmem %s3654_s2, 256 }
 0x988   : > { %p3657_p6 = scmp.lt.s32.totalorder %s3655_s27, %s3649_s7 }
 0x989   : > { %v2390_v61 = vpack.c.bf16 %v2376_v55, %v2376_v55  ;;  %v2418_v63 = vunpack.c.l.b16 %v2391_v60 }
 0x98a   : > { %p3658_p5 = por %p3657_p6, %p3656_p0 }
 0x98b   : > { %v2417_v62 = vunpack.c.l.b16 %v2390_v61 }
 0x98c   : > { %p3659_p9 = pnand %p3658_p5, %p3652_p1 }
 0x98d   : > { %v2424_v2 = vsel %vm1575_vm9, %v2417_v62, %v2423_v59  ;;  %v2962_v59 = vld [vmem:[%s4640_s3] ss:$0 sm:$0xff] }
 0x98e   : > { %v2425_v56 = vsel %vm1577_vm10, %v2418_v63, %v2424_v2 }
 0x98f   : > { %v2426_v35 = vpack.c.b16 %v2425_v56, %v2425_v56 }
 0x991   : > { %3137 = vmatmul.mubr.msk.bf16.vlgmr.msra.gmra.mrb[20].mxu0 %vm895_vm1, %v2426_v35 }
 0x992   : > { %3156 = vmatprep.mubr.msk.bf16.mxu0 %vm3743_vm0, %v3742_v0  ;;  %3149 = vmatpush3.bf16.msra.mxu0 %v3323_v1 }
 0x993   : > { %3150 = vmatprep.subr.bf16.mxu0 %v3742_v0 }
 0x996   : > { %3151 = vmatpush3.bf16.msra.mxu0 %v3324_v23 }
 0x997   : > { %3152 = vmatprep.subr.bf16.mxu0 %v3742_v0 }
 0x99a   : > { %3153 = vmatpush3.bf16.msra.mxu0 %v3325_v27 }
 0x99b   : > { %3154 = vmatprep.subr.bf16.mxu0 %v3742_v0  ;;  %v2955_v0 = vld [vmem:[%s4557_s21] ss:$0 sm:$0xff] }
 0x99e   : > { %3155 = vmatpush3.bf16.msra.mxu0 %v3326_v32 }
 0xa64   : > { %v2476_v6 = vpop.f32.mrb[20].mxu0 }
 0xa65   : > { %v2477_v57 = vadd.f32 %v2945_v4, %v2476_v6  ;;  %v3138_v58 = vpop.f32.mrb[21].mxu0 }
 0xa66   : > { %v2479_v11 = vpop.f32.mrb[22].mxu0 }
 0xa67   : > { %v3139_v54 = vpop.f32.mrb[23].mxu0  ;;  %v2482_v13 = vadd.f32 %v2477_v57, %v4331_v47  ;;  %v3322_v47 = vld [vmem:[%s4554_s18 + $0x8] sm:$0xff]  }
 0xa68   : > { %3143 = vmatpush3.bf16.msra.mxu1 %v3322_v47 }
 0xa69   : > { %v2485_v14 = vsel %vm895_vm1, %v2482_v13, 0.0 }
 0xa6a   : > { %2486 = vadd.xlane.f32.xlu1 %v2485_v14 }
 0xaf7   : > { %v2487_v9 = vpop.xlane.xlu1 %2486 }
 0xaf8   : > { %v2488_v15 = vmul.f32 0.03125, %v2487_v9 }
 0xafa   : > { %v2489_v17 = vsub.f32 %v2482_v13, %v2488_v15 }
 0xafc   : > { %v2490_v18 = vmul.f32 %v2489_v17, %v2489_v17 }
 0xafe   : > { %v2491_v10 = vsel %vm895_vm1, %v2490_v18, 0.0 }
 0xaff   : > { %2492 = vadd.xlane.f32.xlu0 %v2491_v10 }
 0xb8c   : > { %v2493_v24 = vpop.xlane.xlu0 %2492 }
 0xb8d   : > { %v2494_v5 = vmul.f32 0.03125, %v2493_v24 }
 0xb8f   : > { %v2495_v25 = vadd.f32 1e-05, %v2494_v5 }
 0xb91   : > { %3393 = vrsqrt.f32 %v2495_v25 }
 0xb9b   : > { %v3394_v7 = vpop.eup %3393 }
 0xb9c   : > { %v2497_v16 = vmul.f32 %v3394_v7, %v2489_v17 }
 0xb9e   : > { %v2504_v20 = vmul.f32 %v2949_v12, %v2497_v16 }
 0xba0   : > { %v2511_v19 = vadd.f32 %v2950_v30, %v2504_v20 }
 0xba2   : > { %v2512_v8 = vpack.c.bf16 %v2511_v19, %v2511_v19 }
 0xba4   : > { %3145 = vmatmul.mubr.msk.bf16.vlgmr.msra.gmra.mrb[28].mxu1 %vm895_vm1, %v2512_v8 }
 0xc77   : > { %v2573_v34 = vpop.f32.mrb[28].mxu1 }
 0xc78   : > { %v2574_v37 = vadd.f32 %v2951_v33, %v2573_v34  ;;  %v3146_v31 = vpop.f32.mrb[29].mxu1 }
 0xc79   : > { %v2576_v38 = vpop.f32.mrb[30].mxu1 }
 0xc7a   : > { %v2579_v40 = vmax.f32 %v2574_v37, 0.0  ;;  %v3147_v41 = vpop.f32.mrb[31].mxu1 }
 0xc7c   : > { %v2580_v39 = vpack.c.bf16 %v2579_v40, %v2579_v40 }
 0xc7e   : > { %3157 = vmatmul.mubr.msk.bf16.vlgmr.msra.gmra.mrb[24].mxu0 %vm2620_vm11, %v2580_v39 }
 0xd51   : > { %v2658_v42 = vpop.f32.mrb[24].mxu0 }
 0xd52   : > { %v2659_v43 = vadd.f32 %v2955_v0, %v2658_v42  ;;  %v3158_v22 = vpop.f32.mrb[25].mxu0 }
 0xd53   : > { %v2661_v45 = vpop.f32.mrb[26].mxu0 }
 0xd54   : > { %v3159_v46 = vpop.f32.mrb[27].mxu0  ;;  %v2664_v48 = vadd.f32 %v2659_v43, %v2511_v19 }
 0xd56   : > { %v2667_v49 = vsel %vm895_vm1, %v2664_v48, 0.0 }
 0xd57   : > { %2668 = vadd.xlane.f32.xlu1 %v2667_v49 }
 0xde4   : > { %v2669_v50 = vpop.xlane.xlu1 %2668 }
 0xde5   : > { %v2670_v29 = vmul.f32 0.03125, %v2669_v50 }
 0xde7   : > { %v2671_v52 = vsub.f32 %v2664_v48, %v2670_v29 }
 0xde9   : > { %v2672_v26 = vmul.f32 %v2671_v52, %v2671_v52 }
 0xdeb   : > { %v2673_v53 = vsel %vm895_vm1, %v2672_v26, 0.0 }
 0xdec   : > { %2674 = vadd.xlane.f32.xlu1 %v2673_v53 }
 0xe79   : > { %v2675_v28 = vpop.xlane.xlu1 %2674 }
 0xe7a   : > { %v2676_v51 = vmul.f32 0.03125, %v2675_v28 }
 0xe7c   : > { %v2677_v3 = vadd.f32 1e-05, %v2676_v51 }
 0xe7e   : > { %3395 = vrsqrt.f32 %v2677_v3 }
 0xe88   : > { %v3396_v36 = vpop.eup %3395 }
 0xe89   : > { %v2679_v55 = vmul.f32 %v3396_v36, %v2671_v52 }
 0xe8b   : > { %v2686_v60 = vmul.f32 %v2961_v44, %v2679_v55 }
 0xe8d   : > { %v2693_v61 = vadd.f32 %v2962_v59, %v2686_v60 }
 0xe8f   : > { %2694 = vst.msk [vmem:[%s854_s4] sm:$0xff] %vm895_vm1, %v2693_v61 }
 0xe90   : > { %3662 = shalt.err (!%p3659_p9)
}
 0xe91   : > { %s3663_s9 = scalar_lea.hbm %s4493_s10, 128  ;;  %s3667_s29 = scalar_lea.hbm %s4641_s11, 256 }
 0xe92   : > { %p3664_p12 = scmp.ne.s32.totalorder %s4493_s10, %s3663_s9  ;;  %p3668_p3 = scmp.lt.u32.totalorder %s4493_s10, %s4641_s11 }
 0xe93   : > { %p3669_p4 = scmp.lt.u32.totalorder %s3667_s29, %s3663_s9  ;;  %p3671_p8 = scmp.lt.u32.totalorder %s3663_s9, %s4493_s10 }
 0xe94   : > { %p3665_p10 = pnand %p3664_p12, %p4642_p11 }
 0xe95   : > { %p3670_p7 = por %p3669_p4, %p3668_p3 }
 0xe96   : > { %p3666_p2 = pneg %p3665_p10 }
 0xe97   : > { %p3672_p13 = por %p3671_p8, %p3670_p7 }
 0xe99   : > { %p3673_p1 = pnand %p3672_p13, %p3666_p2 }
 0xe9b   : > { %3676 = shalt.err (!%p3673_p1)
}
 0xe9c   : > { %3212 = dma.vmem_to_hbm [thread:$0]  (%p4642_p11), %s4495_s28, 128, %s4493_s10, %s2696_s8  }
 0xe9d PF: > { %s4643_s5 = sld [smem:[#allocation27_spill]]  ;;  %s4644_s4 = sld [smem:[#allocation24_spill]] }
 0xe9e   : > { %s4645_s7 = sld [smem:[#allocation31_spill]] }
 0xea3   : > { %p3264_p0 = scmp.ge.s32.totalorder %s4643_s5, 2  ;;  %s2721_s6 = sand.u32 1, %s4644_s4  }
 0xea4   : > { %p4646_p6 = scmp.ne.s32.totalorder %s4645_s7, 0  ;;  %s2722_s2 = scalar_lea.sflag [#allocation4], %s2721_s6 }
 0xea6   : > { %p3243_p5 = pnand %p3264_p0, %p4646_p6 }
 0xea8   : > { %3714 = dma.done.wait (!%p3243_p5), %s2722_s2, 128  }
 0xea9   : > { %3716 = vsyncadd (!%p3243_p5), %s2722_s2, 4294967168  ;;  %s4647_s28 = sld [smem:[#allocation28_spill]]  ;;  %s4648_s5 = sld [smem:[#allocation25_spill]] }
 0xeaa   : > { %s4649_s26 = sld [smem:[#allocation26_spill]]  ;;  %s4650_s27 = sld [smem:[#allocation29_spill]] }
 0xeaf   : > { %p39_p9 = scmp.ge.s32.totalorder %s4647_s28, 4  }
 0xeb1   :  { %41 = sbr.rel (!%p39_p9) target bundleno = 25 (0x19), region = 191 }
 0xeb8   :  { %2727 = vsyncpa [#allocation3], 1 }
 0xeb9   :  { %2729 = vsyncpa [#allocation3 + $0x1], 1 }
 0xeba   :  { %2730 = vsyncpa [#allocation6], 1 }
 0xebb   :  { %2731 = vsyncpa [#allocation9], 1 }
 0xebc   :  { %2732 = vsyncpa [#allocation12], 1 }
 0xebd   :  { %2733 = vsyncpa [#allocation15], 1 }
 0xebe   :  { %2734 = vsyncpa [#allocation4], 1 }
 0xebf   :  { %2736 = vsyncpa [#allocation4 + $0x1], 1 }

</bundles_post_ra>
